<compile_context>
chip_gen: v7x
topology: tpu7x:2x2x1
jax: 0.10.0
libtpu: 0.0.40
codegen_flags: <defaults>
</compile_context>

<pallas_src>
import functools

import jax
import jax.numpy as jnp
from jax import lax
from jax.experimental import pallas as pl
from jax.experimental.pallas import tpu as pltpu  # noqa: F401


def _round_up(n, m):
    return (n + m - 1) // m * m


_SUB = 8  # sublane block per pooled position in the fused kernel (aligned slices)


# ------------------------------ Pallas kernels ------------------------------

def _conv_pool_kernel(p_ref, w_ref, b_ref, o_ref):
    """conv-as-matmul + 2x2 max-pool + bias + ReLU, single MXU push.

    p_ref: (Kp, 4*Pp)  im2col patches; the 4 pool-window quadrants are
                       concatenated along the lane axis in Pp-sized blocks.
    w_ref: (Cp, Kp)    flattened conv weights (zero-padded).
    b_ref: (Cp, 1)     bias (zero-padded channels).
    o_ref: (Cp, Pp)    pooled activations, lane-dense (Pp % 128 == 0).
    """
    pp = o_ref.shape[1]
    big = jnp.dot(w_ref[...], p_ref[...], preferred_element_type=jnp.float32)
    m = jnp.maximum(jnp.maximum(big[:, 0 * pp:1 * pp], big[:, 1 * pp:2 * pp]),
                    jnp.maximum(big[:, 2 * pp:3 * pp], big[:, 3 * pp:4 * pp]))
    # max-pool and ReLU commute (both monotone) and the bias is identical
    # across the 4 quadrants, so one bias + ReLU after the max is exact.
    o_ref[...] = jnp.maximum(m + b_ref[...], 0.0).astype(o_ref.dtype)


def _conv2_mlp_kernel(p_ref, w2_ref, b2_ref, w1_ref, b1_ref,
                      wf2_ref, bf2_ref, wf3_ref, bf3_ref, o_ref,
                      *, n_valid, n_spatial):
    """conv2+bias+ReLU+pool fused with fc1(+ReLU) -> fc2(+ReLU) -> fc3.

    Conv2 runs transposed (patch-rows x weight-cols) so the pooled result
    lands as rows = (pooled position)*_SUB + sample, cols = channel.  fc1 is
    a sum over the pooled positions of tiny aligned (8,Cp)x(Cp,120) dots
    against a row-permuted fc1 weight (the torch.flatten (c,h,w) permutation
    was folded into the weight at prep time), so no in-kernel relayout.
    """
    pp = p_ref.shape[0] // 4
    c2 = w2_ref.shape[1]

    mt = jnp.dot(p_ref[...], w2_ref[...], preferred_element_type=jnp.float32)
    mt = jnp.maximum(jnp.maximum(mt[0 * pp:1 * pp], mt[1 * pp:2 * pp]),
                     jnp.maximum(mt[2 * pp:3 * pp], mt[3 * pp:4 * pp]))
    mt = jnp.maximum(mt + b2_ref[...], 0.0)          # (pp, c2)

    w1 = w1_ref[...]                                  # (n_spatial*c2, 120)
    h = jnp.zeros((_SUB, w1.shape[1]), jnp.float32)
    for s in range(n_spatial):                        # statically unrolled
        h = h + jnp.dot(mt[s * _SUB:(s + 1) * _SUB, :],
                        w1[s * c2:(s + 1) * c2, :],
                        preferred_element_type=jnp.float32)
    h = jnp.maximum(h + b1_ref[...], 0.0)
    h = jnp.maximum(jnp.dot(h, wf2_ref[...], preferred_element_type=jnp.float32)
                    + bf2_ref[...], 0.0)
    h = jnp.dot(h, wf3_ref[...], preferred_element_type=jnp.float32) + bf3_ref[...]
    # rows n_valid.._SUB-1 carry harmless padding garbage; drop them here.
    o_ref[...] = h[:n_valid, :].astype(o_ref.dtype)


# --------------------------------- wrappers ---------------------------------

def conv_relu_pool(x, w, b):
    """VALID conv + ReLU + 2x2/stride-2 max-pool.

    x: (N, Cin, H, W) NCHW; w: (Cout, Cin, KH, KW); b: (Cout,)
    Returns channel-first (Cout, N, H', W') so the next stage's im2col needs
    no transpose.
    """
    N, Cin, H, W = x.shape
    Cout, Cin2, KH, KW = w.shape
    assert Cin == Cin2
    OH, OW = H - KH + 1, W - KW + 1
    assert OH % 2 == 0 and OW % 2 == 0  # floor-mode MaxPool2d not handled
    POH, POW = OH // 2, OW // 2
    K = Cin * KH * KW
    Kp, Cp = _round_up(K, 8), _round_up(Cout, 8)
    P = N * POH * POW
    Pp = _round_up(P, 128)                       # lane-dense output columns

    # glue: quadrant-grouped im2col (pure data rearrangement; XLA side).
    taps = [x[:, :, i:i + OH, j:j + OW] for i in range(KH) for j in range(KW)]
    t = jnp.stack(taps, axis=2)                  # (N, Cin, KH*KW, OH, OW)
    t = t.reshape(N, K, POH, 2, POW, 2)
    t = t.transpose(3, 5, 1, 0, 2, 4)            # (di, dj, K, N, POH, POW)
    q = t.reshape(4, K, P)
    q = jnp.pad(q, ((0, 0), (0, Kp - K), (0, Pp - P)))
    patches = q.transpose(1, 0, 2).reshape(Kp, 4 * Pp)

    wp = jnp.pad(w.reshape(Cout, K), ((0, Cp - Cout), (0, Kp - K)))
    bp = jnp.pad(b, (0, Cp - Cout)).reshape(Cp, 1)

    out = pl.pallas_call(
        _conv_pool_kernel,
        out_shape=jax.ShapeDtypeStruct((Cp, Pp), x.dtype),
    )(patches, wp, bp)
    return out[:Cout, :P].reshape(Cout, N, POH, POW)


def conv2_mlp(s2, w2, b2, w1, b1, wf2, bf2, wf3, bf3):
    """conv2+ReLU+pool fused with fc1/fc2/fc3 in a single pallas_call.

    s2: (Cin, N, H, W) channel-first (output layout of conv_relu_pool).
    """
    Cin, N, H, W = s2.shape
    Cout, Cin2, KH, KW = w2.shape
    assert Cin == Cin2 and N <= _SUB
    OH, OW = H - KH + 1, W - KW + 1
    assert OH % 2 == 0 and OW % 2 == 0
    POH, POW = OH // 2, OW // 2
    S = POH * POW                                # 25 pooled positions
    K = Cin * KH * KW                            # 150
    Kp, Cp = _round_up(K, 8), _round_up(Cout, 8)
    Pp = _round_up(S * _SUB, 128)                # 256

    # glue: quadrant-grouped, per-pooled-position-padded im2col (transposed).
    taps = [s2[:, :, i:i + OH, j:j + OW] for i in range(KH) for j in range(KW)]
    t = jnp.stack(taps, axis=1)                  # (Cin, KH*KW, N, OH, OW)
    t = t.reshape(K, N, POH, 2, POW, 2)
    t = t.transpose(3, 5, 0, 2, 4, 1)            # (di, dj, K, POH, POW, N)
    q = t.reshape(4, K, S, N)
    q = jnp.pad(q, ((0, 0), (0, Kp - K), (0, 0), (0, _SUB - N)))
    q = q.reshape(4, Kp, S * _SUB)
    q = jnp.pad(q, ((0, 0), (0, 0), (0, Pp - S * _SUB)))
    p2t = q.transpose(0, 2, 1).reshape(4 * Pp, Kp)    # rows = (quad, s*_SUB+n)

    w2t = jnp.pad(w2.reshape(Cout, K), ((0, Cp - Cout), (0, Kp - K))).T  # (Kp, Cp)
    b2r = jnp.pad(b2, (0, Cp - Cout)).reshape(1, Cp)

    # Fold the torch.flatten (c, h, w) feature order into fc1's rows:
    # row c*S + s  ->  row s*Cp + c  (weight-side permutation, no runtime
    # transpose of activations).
    J = w1.shape[1]
    w1p = w1.reshape(Cout, S, J).transpose(1, 0, 2)
    w1p = jnp.pad(w1p, ((0, 0), (0, Cp - Cout), (0, 0))).reshape(S * Cp, J)

    kern = functools.partial(_conv2_mlp_kernel, n_valid=N, n_spatial=S)
    return pl.pallas_call(
        kern,
        out_shape=jax.ShapeDtypeStruct((N, wf3.shape[1]), s2.dtype),
    )(p2t, w2t, b2r, w1p, b1.reshape(1, -1),
      wf2, bf2.reshape(1, -1), wf3, bf3.reshape(1, -1))


# ------------------------------- Net forward --------------------------------

def init_params(key):
    ks = jax.random.split(key, 10)

    def u(k, shape, fan_in):  # PyTorch-style uniform(-1/sqrt(fan_in), ...)
        bound = 1.0 / jnp.sqrt(jnp.float32(fan_in))
        return jax.random.uniform(k, shape, jnp.float32, -bound, bound)

    return {
        "conv1_w": u(ks[0], (6, 1, 5, 5), 1 * 5 * 5),
        "conv1_b": u(ks[1], (6,), 1 * 5 * 5),
        "conv2_w": u(ks[2], (16, 6, 5, 5), 6 * 5 * 5),
        "conv2_b": u(ks[3], (16,), 6 * 5 * 5),
        "fc1_w": u(ks[4], (16 * 5 * 5, 120), 16 * 5 * 5),
        "fc1_b": u(ks[5], (120,), 16 * 5 * 5),
        "fc2_w": u(ks[6], (120, 84), 120),
        "fc2_b": u(ks[7], (84,), 120),
        "fc3_w": u(ks[8], (84, 10), 84),
        "fc3_b": u(ks[9], (10,), 84),
    }


def net_forward(params, x):
    # x: (N, 1, 32, 32) float32
    s2 = conv_relu_pool(x, params["conv1_w"], params["conv1_b"])  # (6, N, 14, 14)
    return conv2_mlp(s2,
                     params["conv2_w"], params["conv2_b"],
                     params["fc1_w"], params["fc1_b"],
                     params["fc2_w"], params["fc2_b"],
                     params["fc3_w"], params["fc3_b"])            # (N, 10)


# ----------------------------- pure-JAX reference ----------------------------

def net_reference(params, x):
    def conv(x, w, b):
        y = lax.conv_general_dilated(
            x, w, (1, 1), "VALID", dimension_numbers=("NCHW", "OIHW", "NCHW"))
        return jax.nn.relu(y + b[None, :, None, None])

    def pool(x):
        return lax.reduce_window(x, -jnp.inf, lax.max,
                                 (1, 1, 2, 2), (1, 1, 2, 2), "VALID")

    c1 = conv(x, params["conv1_w"], params["conv1_b"])
    s2 = pool(c1)
    c3 = conv(s2, params["conv2_w"], params["conv2_b"])
    s4 = pool(c3).reshape(x.shape[0], -1)
    f5 = jax.nn.relu(s4 @ params["fc1_w"] + params["fc1_b"])
    f6 = jax.nn.relu(f5 @ params["fc2_w"] + params["fc2_b"])
    return f6 @ params["fc3_w"] + params["fc3_b"]


if __name__ == "__main__":
    x = jax.random.normal(jax.random.PRNGKey(0), (2, 1, 32, 32), jnp.float32)
    params = init_params(jax.random.PRNGKey(42))

    out = jax.jit(net_forward)(params, x)
    out = jax.block_until_ready(out)
    assert out.shape == (2, 10)

    ref = net_reference(params, x)
    assert jnp.allclose(out, ref, atol=1e-3, rtol=1e-3), \
        float(jnp.max(jnp.abs(out - ref)))

    print("KERNEL_OK")
</pallas_src>

<mosaic_0001>
module attributes {stable_mosaic.version = 11 : i64} {
  func.func @_conv_pool_kernel(%arg0: memref<32x2048xf32, #tpu.memory_space<vmem>>, %arg1: memref<8x32xf32, #tpu.memory_space<vmem>>, %arg2: memref<8x1xf32, #tpu.memory_space<vmem>>, %arg3: memref<8x512xf32, #tpu.memory_space<vmem>>) attributes {dimension_semantics = [], scalar_prefetch = 0 : i64, scratch_operands = 0 : i64, tpu.core_type = #tpu.core_type<tc>} {
    %c0 = arith.constant 0 : index
    %c0_0 = arith.constant 0 : index
    %0 = vector.load %arg1[%c0, %c0_0] : memref<8x32xf32, #tpu.memory_space<vmem>>, vector<8x32xf32>
    %c0_1 = arith.constant 0 : index
    %c0_2 = arith.constant 0 : index
    %1 = vector.load %arg0[%c0_1, %c0_2] : memref<32x2048xf32, #tpu.memory_space<vmem>>, vector<32x2048xf32>
    %cst = arith.constant dense<0.000000e+00> : vector<8x2048xf32>
    %2 = tpu.matmul %0, %1, %cst {dimension_numbers = #tpu.dot_dimension_numbers<[1], [0], [0], [1], [0, 0, 1, 1], [], []>} : vector<8x32xf32>, vector<32x2048xf32>, vector<8x2048xf32> -> vector<8x2048xf32>
    %3 = vector.extract_strided_slice %2 {offsets = [0, 0], sizes = [8, 512], strides = [1, 1]} : vector<8x2048xf32> to vector<8x512xf32>
    %4 = vector.extract_strided_slice %2 {offsets = [0, 512], sizes = [8, 512], strides = [1, 1]} : vector<8x2048xf32> to vector<8x512xf32>
    %5 = arith.maximumf %3, %4 : vector<8x512xf32>
    %6 = vector.extract_strided_slice %2 {offsets = [0, 1024], sizes = [8, 512], strides = [1, 1]} : vector<8x2048xf32> to vector<8x512xf32>
    %7 = vector.extract_strided_slice %2 {offsets = [0, 1536], sizes = [8, 512], strides = [1, 1]} : vector<8x2048xf32> to vector<8x512xf32>
    %8 = arith.maximumf %6, %7 : vector<8x512xf32>
    %9 = arith.maximumf %5, %8 : vector<8x512xf32>
    %c0_3 = arith.constant 0 : index
    %c0_4 = arith.constant 0 : index
    %10 = vector.load %arg2[%c0_3, %c0_4] : memref<8x1xf32, #tpu.memory_space<vmem>>, vector<8x1xf32>
    %11 = vector.broadcast %10 : vector<8x1xf32> to vector<8x512xf32>
    %12 = arith.addf %9, %11 : vector<8x512xf32>
    %cst_5 = arith.constant 0.000000e+00 : f32
    %13 = vector.broadcast %cst_5 : f32 to vector<8x512xf32>
    %14 = arith.maximumf %12, %13 : vector<8x512xf32>
    %c0_6 = arith.constant 0 : index
    %c0_7 = arith.constant 0 : index
    %15 = vector.load %arg3[%c0_6, %c0_7] : memref<8x512xf32, #tpu.memory_space<vmem>>, vector<8x512xf32>
    tpu.vector_store %arg3[%c0_6, %c0_7], %14 {strides = array<i32>} : memref<8x512xf32, #tpu.memory_space<vmem>>, vector<8x512xf32>,
    return
  }
}

module attributes {stable_mosaic.version = 11 : i64} {
  func.func @_conv2_mlp_kernel(%arg0: memref<1024x152xf32, #tpu.memory_space<vmem>>, %arg1: memref<152x16xf32, #tpu.memory_space<vmem>>, %arg2: memref<1x16xf32, #tpu.memory_space<vmem>>, %arg3: memref<400x120xf32, #tpu.memory_space<vmem>>, %arg4: memref<1x120xf32, #tpu.memory_space<vmem>>, %arg5: memref<120x84xf32, #tpu.memory_space<vmem>>, %arg6: memref<1x84xf32, #tpu.memory_space<vmem>>, %arg7: memref<84x10xf32, #tpu.memory_space<vmem>>, %arg8: memref<1x10xf32, #tpu.memory_space<vmem>>, %arg9: memref<2x10xf32, #tpu.memory_space<vmem>>) attributes {dimension_semantics = [], scalar_prefetch = 0 : i64, scratch_operands = 0 : i64, tpu.core_type = #tpu.core_type<tc>} {
    %c0 = arith.constant 0 : index
    %c0_0 = arith.constant 0 : index
    %0 = vector.load %arg0[%c0, %c0_0] : memref<1024x152xf32, #tpu.memory_space<vmem>>, vector<1024x152xf32>
    %c0_1 = arith.constant 0 : index
    %c0_2 = arith.constant 0 : index
    %1 = vector.load %arg1[%c0_1, %c0_2] : memref<152x16xf32, #tpu.memory_space<vmem>>, vector<152x16xf32>
    %cst = arith.constant dense<0.000000e+00> : vector<1024x16xf32>
    %2 = tpu.matmul %0, %1, %cst {dimension_numbers = #tpu.dot_dimension_numbers<[1], [0], [0], [1], [0, 0, 1, 1], [], []>} : vector<1024x152xf32>, vector<152x16xf32>, vector<1024x16xf32> -> vector<1024x16xf32>
    %3 = vector.extract_strided_slice %2 {offsets = [0, 0], sizes = [256, 16], strides = [1, 1]} : vector<1024x16xf32> to vector<256x16xf32>
    %4 = vector.extract_strided_slice %2 {offsets = [256, 0], sizes = [256, 16], strides = [1, 1]} : vector<1024x16xf32> to vector<256x16xf32>
    %5 = arith.maximumf %3, %4 : vector<256x16xf32>
    %6 = vector.extract_strided_slice %2 {offsets = [512, 0], sizes = [256, 16], strides = [1, 1]} : vector<1024x16xf32> to vector<256x16xf32>
    %7 = vector.extract_strided_slice %2 {offsets = [768, 0], sizes = [256, 16], strides = [1, 1]} : vector<1024x16xf32> to vector<256x16xf32>
    %8 = arith.maximumf %6, %7 : vector<256x16xf32>
    %9 = arith.maximumf %5, %8 : vector<256x16xf32>
    %c0_3 = arith.constant 0 : index
    %c0_4 = arith.constant 0 : index
    %10 = vector.load %arg2[%c0_3, %c0_4] : memref<1x16xf32, #tpu.memory_space<vmem>>, vector<1x16xf32>
    %11 = vector.broadcast %10 : vector<1x16xf32> to vector<256x16xf32>
    %12 = arith.addf %9, %11 : vector<256x16xf32>
    %cst_5 = arith.constant 0.000000e+00 : f32
    %13 = vector.broadcast %cst_5 : f32 to vector<256x16xf32>
    %14 = arith.maximumf %12, %13 : vector<256x16xf32>
    %c0_6 = arith.constant 0 : index
    %c0_7 = arith.constant 0 : index
    %15 = vector.load %arg3[%c0_6, %c0_7] : memref<400x120xf32, #tpu.memory_space<vmem>>, vector<400x120xf32>
    %cst_8 = arith.constant 0.000000e+00 : f32
    %16 = vector.broadcast %cst_8 : f32 to vector<8x120xf32>
    %17 = vector.extract_strided_slice %14 {offsets = [0, 0], sizes = [8, 16], strides = [1, 1]} : vector<256x16xf32> to vector<8x16xf32>
    %18 = vector.extract_strided_slice %15 {offsets = [0, 0], sizes = [16, 120], strides = [1, 1]} : vector<400x120xf32> to vector<16x120xf32>
    %cst_9 = arith.constant dense<0.000000e+00> : vector<8x120xf32>
    %19 = tpu.matmul %17, %18, %cst_9 {dimension_numbers = #tpu.dot_dimension_numbers<[1], [0], [0], [1], [0, 0, 1, 1], [], []>} : vector<8x16xf32>, vector<16x120xf32>, vector<8x120xf32> -> vector<8x120xf32>
    %20 = arith.addf %16, %19 : vector<8x120xf32>
    %21 = vector.extract_strided_slice %14 {offsets = [8, 0], sizes = [8, 16], strides = [1, 1]} : vector<256x16xf32> to vector<8x16xf32>
    %22 = vector.extract_strided_slice %15 {offsets = [16, 0], sizes = [16, 120], strides = [1, 1]} : vector<400x120xf32> to vector<16x120xf32>
    %cst_10 = arith.constant dense<0.000000e+00> : vector<8x120xf32>
    %23 = tpu.matmul %21, %22, %cst_10 {dimension_numbers = #tpu.dot_dimension_numbers<[1], [0], [0], [1], [0, 0, 1, 1], [], []>} : vector<8x16xf32>, vector<16x120xf32>, vector<8x120xf32> -> vector<8x120xf32>
    %24 = arith.addf %20, %23 : vector<8x120xf32>
    %25 = vector.extract_strided_slice %14 {offsets = [16, 0], sizes = [8, 16], strides = [1, 1]} : vector<256x16xf32> to vector<8x16xf32>
    %26 = vector.extract_strided_slice %15 {offsets = [32, 0], sizes = [16, 120], strides = [1, 1]} : vector<400x120xf32> to vector<16x120xf32>
    %cst_11 = arith.constant dense<0.000000e+00> : vector<8x120xf32>
    %27 = tpu.matmul %25, %26, %cst_11 {dimension_numbers = #tpu.dot_dimension_numbers<[1], [0], [0], [1], [0, 0, 1, 1], [], []>} : vector<8x16xf32>, vector<16x120xf32>, vector<8x120xf32> -> vector<8x120xf32>
    %28 = arith.addf %24, %27 : vector<8x120xf32>
    %29 = vector.extract_strided_slice %14 {offsets = [24, 0], sizes = [8, 16], strides = [1, 1]} : vector<256x16xf32> to vector<8x16xf32>
    %30 = vector.extract_strided_slice %15 {offsets = [48, 0], sizes = [16, 120], strides = [1, 1]} : vector<400x120xf32> to vector<16x120xf32>
    %cst_12 = arith.constant dense<0.000000e+00> : vector<8x120xf32>
    %31 = tpu.matmul %29, %30, %cst_12 {dimension_numbers = #tpu.dot_dimension_numbers<[1], [0], [0], [1], [0, 0, 1, 1], [], []>} : vector<8x16xf32>, vector<16x120xf32>, vector<8x120xf32> -> vector<8x120xf32>
    %32 = arith.addf %28, %31 : vector<8x120xf32>
    %33 = vector.extract_strided_slice %14 {offsets = [32, 0], sizes = [8, 16], strides = [1, 1]} : vector<256x16xf32> to vector<8x16xf32>
    %34 = vector.extract_strided_slice %15 {offsets = [64, 0], sizes = [16, 120], strides = [1, 1]} : vector<400x120xf32> to vector<16x120xf32>
    %cst_13 = arith.constant dense<0.000000e+00> : vector<8x120xf32>
    %35 = tpu.matmul %33, %34, %cst_13 {dimension_numbers = #tpu.dot_dimension_numbers<[1], [0], [0], [1], [0, 0, 1, 1], [], []>} : vector<8x16xf32>, vector<16x120xf32>, vector<8x120xf32> -> vector<8x120xf32>
    %36 = arith.addf %32, %35 : vector<8x120xf32>
    %37 = vector.extract_strided_slice %14 {offsets = [40, 0], sizes = [8, 16], strides = [1, 1]} : vector<256x16xf32> to vector<8x16xf32>
    %38 = vector.extract_strided_slice %15 {offsets = [80, 0], sizes = [16, 120], strides = [1, 1]} : vector<400x120xf32> to vector<16x120xf32>
    %cst_14 = arith.constant dense<0.000000e+00> : vector<8x120xf32>
    %39 = tpu.matmul %37, %38, %cst_14 {dimension_numbers = #tpu.dot_dimension_numbers<[1], [0], [0], [1], [0, 0, 1, 1], [], []>} : vector<8x16xf32>, vector<16x120xf32>, vector<8x120xf32> -> vector<8x120xf32>
    %40 = arith.addf %36, %39 : vector<8x120xf32>
    %41 = vector.extract_strided_slice %14 {offsets = [48, 0], sizes = [8, 16], strides = [1, 1]} : vector<256x16xf32> to vector<8x16xf32>
    %42 = vector.extract_strided_slice %15 {offsets = [96, 0], sizes = [16, 120], strides = [1, 1]} : vector<400x120xf32> to vector<16x120xf32>
    %cst_15 = arith.constant dense<0.000000e+00> : vector<8x120xf32>
    %43 = tpu.matmul %41, %42, %cst_15 {dimension_numbers = #tpu.dot_dimension_numbers<[1], [0], [0], [1], [0, 0, 1, 1], [], []>} : vector<8x16xf32>, vector<16x120xf32>, vector<8x120xf32> -> vector<8x120xf32>
    %44 = arith.addf %40, %43 : vector<8x120xf32>
    %45 = vector.extract_strided_slice %14 {offsets = [56, 0], sizes = [8, 16], strides = [1, 1]} : vector<256x16xf32> to vector<8x16xf32>
    %46 = vector.extract_strided_slice %15 {offsets = [112, 0], sizes = [16, 120], strides = [1, 1]} : vector<400x120xf32> to vector<16x120xf32>
    %cst_16 = arith.constant dense<0.000000e+00> : vector<8x120xf32>
    %47 = tpu.matmul %45, %46, %cst_16 {dimension_numbers = #tpu.dot_dimension_numbers<[1], [0], [0], [1], [0, 0, 1, 1], [], []>} : vector<8x16xf32>, vector<16x120xf32>, vector<8x120xf32> -> vector<8x120xf32>
    %48 = arith.addf %44, %47 : vector<8x120xf32>
    %49 = vector.extract_strided_slice %14 {offsets = [64, 0], sizes = [8, 16], strides = [1, 1]} : vector<256x16xf32> to vector<8x16xf32>
    %50 = vector.extract_strided_slice %15 {offsets = [128, 0], sizes = [16, 120], strides = [1, 1]} : vector<400x120xf32> to vector<16x120xf32>
    %cst_17 = arith.constant dense<0.000000e+00> : vector<8x120xf32>
    %51 = tpu.matmul %49, %50, %cst_17 {dimension_numbers = #tpu.dot_dimension_numbers<[1], [0], [0], [1], [0, 0, 1, 1], [], []>} : vector<8x16xf32>, vector<16x120xf32>, vector<8x120xf32> -> vector<8x120xf32>
    %52 = arith.addf %48, %51 : vector<8x120xf32>
    %53 = vector.extract_strided_slice %14 {offsets = [72, 0], sizes = [8, 16], strides = [1, 1]} : vector<256x16xf32> to vector<8x16xf32>
    %54 = vector.extract_strided_slice %15 {offsets = [144, 0], sizes = [16, 120], strides = [1, 1]} : vector<400x120xf32> to vector<16x120xf32>
    %cst_18 = arith.constant dense<0.000000e+00> : vector<8x120xf32>
    %55 = tpu.matmul %53, %54, %cst_18 {dimension_numbers = #tpu.dot_dimension_numbers<[1], [0], [0], [1], [0, 0, 1, 1], [], []>} : vector<8x16xf32>, vector<16x120xf32>, vector<8x120xf32> -> vector<8x120xf32>
    %56 = arith.addf %52, %55 : vector<8x120xf32>
    %57 = vector.extract_strided_slice %14 {offsets = [80, 0], sizes = [8, 16], strides = [1, 1]} : vector<256x16xf32> to vector<8x16xf32>
    %58 = vector.extract_strided_slice %15 {offsets = [160, 0], sizes = [16, 120], strides = [1, 1]} : vector<400x120xf32> to vector<16x120xf32>
    %cst_19 = arith.constant dense<0.000000e+00> : vector<8x120xf32>
    %59 = tpu.matmul %57, %58, %cst_19 {dimension_numbers = #tpu.dot_dimension_numbers<[1], [0], [0], [1], [0, 0, 1, 1], [], []>} : vector<8x16xf32>, vector<16x120xf32>, vector<8x120xf32> -> vector<8x120xf32>
    %60 = arith.addf %56, %59 : vector<8x120xf32>
    %61 = vector.extract_strided_slice %14 {offsets = [88, 0], sizes = [8, 16], strides = [1, 1]} : vector<256x16xf32> to vector<8x16xf32>
    %62 = vector.extract_strided_slice %15 {offsets = [176, 0], sizes = [16, 120], strides = [1, 1]} : vector<400x120xf32> to vector<16x120xf32>
    %cst_20 = arith.constant dense<0.000000e+00> : vector<8x120xf32>
    %63 = tpu.matmul %61, %62, %cst_20 {dimension_numbers = #tpu.dot_dimension_numbers<[1], [0], [0], [1], [0, 0, 1, 1], [], []>} : vector<8x16xf32>, vector<16x120xf32>, vector<8x120xf32> -> vector<8x120xf32>
    %64 = arith.addf %60, %63 : vector<8x120xf32>
    %65 = vector.extract_strided_slice %14 {offsets = [96, 0], sizes = [8, 16], strides = [1, 1]} : vector<256x16xf32> to vector<8x16xf32>
    %66 = vector.extract_strided_slice %15 {offsets = [192, 0], sizes = [16, 120], strides = [1, 1]} : vector<400x120xf32> to vector<16x120xf32>
    %cst_21 = arith.constant dense<0.000000e+00> : vector<8x120xf32>
    %67 = tpu.matmul %65, %66, %cst_21 {dimension_numbers = #tpu.dot_dimension_numbers<[1], [0], [0], [1], [0, 0, 1, 1], [], []>} : vector<8x16xf32>, vector<16x120xf32>, vector<8x120xf32> -> vector<8x120xf32>
    %68 = arith.addf %64, %67 : vector<8x120xf32>
    %69 = vector.extract_strided_slice %14 {offsets = [104, 0], sizes = [8, 16], strides = [1, 1]} : vector<256x16xf32> to vector<8x16xf32>
    %70 = vector.extract_strided_slice %15 {offsets = [208, 0], sizes = [16, 120], strides = [1, 1]} : vector<400x120xf32> to vector<16x120xf32>
    %cst_22 = arith.constant dense<0.000000e+00> : vector<8x120xf32>
    %71 = tpu.matmul %69, %70, %cst_22 {dimension_numbers = #tpu.dot_dimension_numbers<[1], [0], [0], [1], [0, 0, 1, 1], [], []>} : vector<8x16xf32>, vector<16x120xf32>, vector<8x120xf32> -> vector<8x120xf32>
    %72 = arith.addf %68, %71 : vector<8x120xf32>
    %73 = vector.extract_strided_slice %14 {offsets = [112, 0], sizes = [8, 16], strides = [1, 1]} : vector<256x16xf32> to vector<8x16xf32>
    %74 = vector.extract_strided_slice %15 {offsets = [224, 0], sizes = [16, 120], strides = [1, 1]} : vector<400x120xf32> to vector<16x120xf32>
    %cst_23 = arith.constant dense<0.000000e+00> : vector<8x120xf32>
    %75 = tpu.matmul %73, %74, %cst_23 {dimension_numbers = #tpu.dot_dimension_numbers<[1], [0], [0], [1], [0, 0, 1, 1], [], []>} : vector<8x16xf32>, vector<16x120xf32>, vector<8x120xf32> -> vector<8x120xf32>
    %76 = arith.addf %72, %75 : vector<8x120xf32>
    %77 = vector.extract_strided_slice %14 {offsets = [120, 0], sizes = [8, 16], strides = [1, 1]} : vector<256x16xf32> to vector<8x16xf32>
    %78 = vector.extract_strided_slice %15 {offsets = [240, 0], sizes = [16, 120], strides = [1, 1]} : vector<400x120xf32> to vector<16x120xf32>
    %cst_24 = arith.constant dense<0.000000e+00> : vector<8x120xf32>
    %79 = tpu.matmul %77, %78, %cst_24 {dimension_numbers = #tpu.dot_dimension_numbers<[1], [0], [0], [1], [0, 0, 1, 1], [], []>} : vector<8x16xf32>, vector<16x120xf32>, vector<8x120xf32> -> vector<8x120xf32>
    %80 = arith.addf %76, %79 : vector<8x120xf32>
    %81 = vector.extract_strided_slice %14 {offsets = [128, 0], sizes = [8, 16], strides = [1, 1]} : vector<256x16xf32> to vector<8x16xf32>
    %82 = vector.extract_strided_slice %15 {offsets = [256, 0], sizes = [16, 120], strides = [1, 1]} : vector<400x120xf32> to vector<16x120xf32>
    %cst_25 = arith.constant dense<0.000000e+00> : vector<8x120xf32>
    %83 = tpu.matmul %81, %82, %cst_25 {dimension_numbers = #tpu.dot_dimension_numbers<[1], [0], [0], [1], [0, 0, 1, 1], [], []>} : vector<8x16xf32>, vector<16x120xf32>, vector<8x120xf32> -> vector<8x120xf32>
    %84 = arith.addf %80, %83 : vector<8x120xf32>
    %85 = vector.extract_strided_slice %14 {offsets = [136, 0], sizes = [8, 16], strides = [1, 1]} : vector<256x16xf32> to vector<8x16xf32>
    %86 = vector.extract_strided_slice %15 {offsets = [272, 0], sizes = [16, 120], strides = [1, 1]} : vector<400x120xf32> to vector<16x120xf32>
    %cst_26 = arith.constant dense<0.000000e+00> : vector<8x120xf32>
    %87 = tpu.matmul %85, %86, %cst_26 {dimension_numbers = #tpu.dot_dimension_numbers<[1], [0], [0], [1], [0, 0, 1, 1], [], []>} : vector<8x16xf32>, vector<16x120xf32>, vector<8x120xf32> -> vector<8x120xf32>
    %88 = arith.addf %84, %87 : vector<8x120xf32>
    %89 = vector.extract_strided_slice %14 {offsets = [144, 0], sizes = [8, 16], strides = [1, 1]} : vector<256x16xf32> to vector<8x16xf32>
    %90 = vector.extract_strided_slice %15 {offsets = [288, 0], sizes = [16, 120], strides = [1, 1]} : vector<400x120xf32> to vector<16x120xf32>
    %cst_27 = arith.constant dense<0.000000e+00> : vector<8x120xf32>
    %91 = tpu.matmul %89, %90, %cst_27 {dimension_numbers = #tpu.dot_dimension_numbers<[1], [0], [0], [1], [0, 0, 1, 1], [], []>} : vector<8x16xf32>, vector<16x120xf32>, vector<8x120xf32> -> vector<8x120xf32>
    %92 = arith.addf %88, %91 : vector<8x120xf32>
    %93 = vector.extract_strided_slice %14 {offsets = [152, 0], sizes = [8, 16], strides = [1, 1]} : vector<256x16xf32> to vector<8x16xf32>
    %94 = vector.extract_strided_slice %15 {offsets = [304, 0], sizes = [16, 120], strides = [1, 1]} : vector<400x120xf32> to vector<16x120xf32>
    %cst_28 = arith.constant dense<0.000000e+00> : vector<8x120xf32>
    %95 = tpu.matmul %93, %94, %cst_28 {dimension_numbers = #tpu.dot_dimension_numbers<[1], [0], [0], [1], [0, 0, 1, 1], [], []>} : vector<8x16xf32>, vector<16x120xf32>, vector<8x120xf32> -> vector<8x120xf32>
    %96 = arith.addf %92, %95 : vector<8x120xf32>
    %97 = vector.extract_strided_slice %14 {offsets = [160, 0], sizes = [8, 16], strides = [1, 1]} : vector<256x16xf32> to vector<8x16xf32>
    %98 = vector.extract_strided_slice %15 {offsets = [320, 0], sizes = [16, 120], strides = [1, 1]} : vector<400x120xf32> to vector<16x120xf32>
    %cst_29 = arith.constant dense<0.000000e+00> : vector<8x120xf32>
    %99 = tpu.matmul %97, %98, %cst_29 {dimension_numbers = #tpu.dot_dimension_numbers<[1], [0], [0], [1], [0, 0, 1, 1], [], []>} : vector<8x16xf32>, vector<16x120xf32>, vector<8x120xf32> -> vector<8x120xf32>
    %100 = arith.addf %96, %99 : vector<8x120xf32>
    %101 = vector.extract_strided_slice %14 {offsets = [168, 0], sizes = [8, 16], strides = [1, 1]} : vector<256x16xf32> to vector<8x16xf32>
    %102 = vector.extract_strided_slice %15 {offsets = [336, 0], sizes = [16, 120], strides = [1, 1]} : vector<400x120xf32> to vector<16x120xf32>
    %cst_30 = arith.constant dense<0.000000e+00> : vector<8x120xf32>
    %103 = tpu.matmul %101, %102, %cst_30 {dimension_numbers = #tpu.dot_dimension_numbers<[1], [0], [0], [1], [0, 0, 1, 1], [], []>} : vector<8x16xf32>, vector<16x120xf32>, vector<8x120xf32> -> vector<8x120xf32>
    %104 = arith.addf %100, %103 : vector<8x120xf32>
    %105 = vector.extract_strided_slice %14 {offsets = [176, 0], sizes = [8, 16], strides = [1, 1]} : vector<256x16xf32> to vector<8x16xf32>
    %106 = vector.extract_strided_slice %15 {offsets = [352, 0], sizes = [16, 120], strides = [1, 1]} : vector<400x120xf32> to vector<16x120xf32>
    %cst_31 = arith.constant dense<0.000000e+00> : vector<8x120xf32>
    %107 = tpu.matmul %105, %106, %cst_31 {dimension_numbers = #tpu.dot_dimension_numbers<[1], [0], [0], [1], [0, 0, 1, 1], [], []>} : vector<8x16xf32>, vector<16x120xf32>, vector<8x120xf32> -> vector<8x120xf32>
    %108 = arith.addf %104, %107 : vector<8x120xf32>
    %109 = vector.extract_strided_slice %14 {offsets = [184, 0], sizes = [8, 16], strides = [1, 1]} : vector<256x16xf32> to vector<8x16xf32>
    %110 = vector.extract_strided_slice %15 {offsets = [368, 0], sizes = [16, 120], strides = [1, 1]} : vector<400x120xf32> to vector<16x120xf32>
    %cst_32 = arith.constant dense<0.000000e+00> : vector<8x120xf32>
    %111 = tpu.matmul %109, %110, %cst_32 {dimension_numbers = #tpu.dot_dimension_numbers<[1], [0], [0], [1], [0, 0, 1, 1], [], []>} : vector<8x16xf32>, vector<16x120xf32>, vector<8x120xf32> -> vector<8x120xf32>
    %112 = arith.addf %108, %111 : vector<8x120xf32>
    %113 = vector.extract_strided_slice %14 {offsets = [192, 0], sizes = [8, 16], strides = [1, 1]} : vector<256x16xf32> to vector<8x16xf32>
    %114 = vector.extract_strided_slice %15 {offsets = [384, 0], sizes = [16, 120], strides = [1, 1]} : vector<400x120xf32> to vector<16x120xf32>
    %cst_33 = arith.constant dense<0.000000e+00> : vector<8x120xf32>
    %115 = tpu.matmul %113, %114, %cst_33 {dimension_numbers = #tpu.dot_dimension_numbers<[1], [0], [0], [1], [0, 0, 1, 1], [], []>} : vector<8x16xf32>, vector<16x120xf32>, vector<8x120xf32> -> vector<8x120xf32>
    %116 = arith.addf %112, %115 : vector<8x120xf32>
    %c0_34 = arith.constant 0 : index
    %c0_35 = arith.constant 0 : index
    %117 = vector.load %arg4[%c0_34, %c0_35] : memref<1x120xf32, #tpu.memory_space<vmem>>, vector<1x120xf32>
    %118 = vector.broadcast %117 : vector<1x120xf32> to vector<8x120xf32>
    %119 = arith.addf %116, %118 : vector<8x120xf32>
    %cst_36 = arith.constant 0.000000e+00 : f32
    %120 = vector.broadcast %cst_36 : f32 to vector<8x120xf32>
    %121 = arith.maximumf %119, %120 : vector<8x120xf32>
    %c0_37 = arith.constant 0 : index
    %c0_38 = arith.constant 0 : index
    %122 = vector.load %arg5[%c0_37, %c0_38] : memref<120x84xf32, #tpu.memory_space<vmem>>, vector<120x84xf32>
    %cst_39 = arith.constant dense<0.000000e+00> : vector<8x84xf32>
    %123 = tpu.matmul %121, %122, %cst_39 {dimension_numbers = #tpu.dot_dimension_numbers<[1], [0], [0], [1], [0, 0, 1, 1], [], []>} : vector<8x120xf32>, vector<120x84xf32>, vector<8x84xf32> -> vector<8x84xf32>
    %c0_40 = arith.constant 0 : index
    %c0_41 = arith.constant 0 : index
    %124 = vector.load %arg6[%c0_40, %c0_41] : memref<1x84xf32, #tpu.memory_space<vmem>>, vector<1x84xf32>
    %125 = vector.broadcast %124 : vector<1x84xf32> to vector<8x84xf32>
    %126 = arith.addf %123, %125 : vector<8x84xf32>
    %cst_42 = arith.constant 0.000000e+00 : f32
    %127 = vector.broadcast %cst_42 : f32 to vector<8x84xf32>
    %128 = arith.maximumf %126, %127 : vector<8x84xf32>
    %c0_43 = arith.constant 0 : index
    %c0_44 = arith.constant 0 : index
    %129 = vector.load %arg7[%c0_43, %c0_44] : memref<84x10xf32, #tpu.memory_space<vmem>>, vector<84x10xf32>
    %cst_45 = arith.constant dense<0.000000e+00> : vector<8x10xf32>
    %130 = tpu.matmul %128, %129, %cst_45 {dimension_numbers = #tpu.dot_dimension_numbers<[1], [0], [0], [1], [0, 0, 1, 1], [], []>} : vector<8x84xf32>, vector<84x10xf32>, vector<8x10xf32> -> vector<8x10xf32>
    %c0_46 = arith.constant 0 : index
    %c0_47 = arith.constant 0 : index
    %131 = vector.load %arg8[%c0_46, %c0_47] : memref<1x10xf32, #tpu.memory_space<vmem>>, vector<1x10xf32>
    %132 = vector.broadcast %131 : vector<1x10xf32> to vector<8x10xf32>
    %133 = arith.addf %130, %132 : vector<8x10xf32>
    %134 = vector.extract_strided_slice %133 {offsets = [0, 0], sizes = [2, 10], strides = [1, 1]} : vector<8x10xf32> to vector<2x10xf32>
    %c0_48 = arith.constant 0 : index
    %c0_49 = arith.constant 0 : index
    %135 = vector.load %arg9[%c0_48, %c0_49] : memref<2x10xf32, #tpu.memory_space<vmem>>, vector<2x10xf32>
    tpu.vector_store %arg9[%c0_48, %c0_49], %134 {strides = array<i32>} : memref<2x10xf32, #tpu.memory_space<vmem>>, vector<2x10xf32>,
    return
  }
}

</mosaic_0001>

<bundles_post_ra>
// kernel: net_forward.2
= control target key start
LH: loop header
LB: loop body
LE: loop exit
PB: predicated region body
PF: predicated region fallthrough
CT: control target
= control target key end

     0   :  { %v760_v3 = vmov 0.0   ;;  %v761_v8 = vmov 0   ;;  %vm79_vm0 = vcmask 261120   ;;  %s1018_s0 = inlined_call_operand.vmem [shape: f32[32,2048], index: 0, kind: input, shape index: {}]   ;;  %s1019_s1 = inlined_call_operand.vmem [shape: f32[8,32], index: 1, kind: input, shape index: {}]   ;;  %s1020_s2 = inlined_call_operand.vmem [shape: f32[8,1], index: 2, kind: input, shape index: {}]   ;;  %s1021_s3 = inlined_call_operand.vmem [shape: f32[8,512], index: 3, kind: output, shape index: {}]  }
   0x1   :  { %v16_v0 = vld [vmem:[%s1018_s0 + $0x8] sm:$0xff]  ;;  %v18_v2 = vld [vmem:[%s1018_s0 + $0x18] sm:$0xff]  ;;  %147 = vmatprep.mubr.f32.mxu0 %v760_v3  ;;  %218 = vmatprep.mubr.f32.mxu1 %v760_v3  ;;  %v15_v6 = vld [vmem:[%s1018_s0] sm:$0xff] }
   0x2   :  { %v32_v1 = vld [vmem:[%s1018_s0 + $0x88] sm:$0xff]  ;;  %v34_v5 = vld [vmem:[%s1018_s0 + $0x98] sm:$0xff]  ;;  %v31_v7 = vld [vmem:[%s1018_s0 + $0x80] sm:$0xff]  ;;  %759 = vset.pattern.permute.xlu0 %v761_v8 }
   0x3   :  { %v693_v4 = vpack.c.bf16 %v32_v1, %v16_v0  ;;  %v701_v9 = vpack.c.bf16 %v34_v5, %v18_v2  ;;  %v695_v10 = vpack.c.bf16 %v31_v7, %v15_v6  ;;  %v17_v11 = vld [vmem:[%s1018_s0 + $0x10] sm:$0xff]  ;;  %v48_v13 = vld [vmem:[%s1018_s0 + $0x108] sm:$0xff]  ;;  %v50_v16 = vld [vmem:[%s1018_s0 + $0x118] sm:$0xff] }
   0x4   :  { %v33_v12 = vld [vmem:[%s1018_s0 + $0x90] sm:$0xff]  ;;  %v64_v15 = vld [vmem:[%s1018_s0 + $0x188] sm:$0xff]  ;;  %v66_v17 = vld [vmem:[%s1018_s0 + $0x198] sm:$0xff] }
   0x5   :  { %694 = vmatprep.subr.bf16.mxu0 %v693_v4  ;;  %v703_v14 = vpack.c.bf16 %v33_v12, %v17_v11  ;;  %702 = vmatprep.subr.bf16.mxu1 %v701_v9  ;;  %v697_v18 = vpack.c.bf16 %v64_v15, %v48_v13  ;;  %v705_v19 = vpack.c.bf16 %v66_v17, %v50_v16  ;;  %v47_v20 = vld [vmem:[%s1018_s0 + $0x100] sm:$0xff]  ;;  %v49_v22 = vld [vmem:[%s1018_s0 + $0x110] sm:$0xff]  ;;  %v20_v25 = vld [vmem:[%s1018_s0 + $0x28] sm:$0xff] }
   0x6   :  { %696 = vmatpush1.bf16.msra.mxu0 %v695_v10  ;;  %v63_v21 = vld [vmem:[%s1018_s0 + $0x180] sm:$0xff]  ;;  %v65_v24 = vld [vmem:[%s1018_s0 + $0x190] sm:$0xff]  ;;  %v36_v28 = vld [vmem:[%s1018_s0 + $0xa8] sm:$0xff] }
   0x7   :  { %704 = vmatpush1.bf16.msra.mxu1 %v703_v14  ;;  %v699_v23 = vpack.c.bf16 %v63_v21, %v47_v20  ;;  %698 = vmatprep.subr.bf16.mxu0 %v697_v18  ;;  %v707_v26 = vpack.c.bf16 %v65_v24, %v49_v22  ;;  %v838_v27 = vld [vmem:[%s1019_s1] sm:$0xff]  ;;  %v22_v29 = vld [vmem:[%s1018_s0 + $0x38] sm:$0xff]  ;;  %v709_v31 = vpack.c.bf16 %v36_v28, %v20_v25  ;;  %v21_v35 = vld [vmem:[%s1018_s0 + $0x30] sm:$0xff] }
   0x8   :  { %706 = vmatprep.subr.bf16.mxu1 %v705_v19  ;;  %v38_v30 = vld [vmem:[%s1018_s0 + $0xb8] sm:$0xff]  ;;  %v19_v33 = vld [vmem:[%s1018_s0 + $0x20] sm:$0xff]  ;;  %v37_v37 = vld [vmem:[%s1018_s0 + $0xb0] sm:$0xff] }
   0x9   :  { %v717_v32 = vpack.c.bf16 %v38_v30, %v22_v29  ;;  %v35_v34 = vld [vmem:[%s1018_s0 + $0xa0] sm:$0xff]  ;;  %v52_v38 = vld [vmem:[%s1018_s0 + $0x128] sm:$0xff]  ;;  %v719_v40 = vpack.c.bf16 %v37_v37, %v21_v35  ;;  %v54_v42 = vld [vmem:[%s1018_s0 + $0x138] sm:$0xff] }
   0xa   :  { %700 = vmatpush1.bf16.msra.mxu0 %v699_v23  ;;  %v711_v36 = vpack.c.bf16 %v35_v34, %v19_v33  ;;  %v68_v39 = vld [vmem:[%s1018_s0 + $0x1a8] sm:$0xff]  ;;  %v70_v43 = vld [vmem:[%s1018_s0 + $0x1b8] sm:$0xff]  ;;  %v51_v44 = vld [vmem:[%s1018_s0 + $0x120] sm:$0xff] }
   0xb   :  { %708 = vmatpush1.bf16.msra.mxu1 %v707_v26  ;;  %710 = vmatprep.subr.bf16.mxu0 %v709_v31  ;;  %v713_v41 = vpack.c.bf16 %v68_v39, %v52_v38  ;;  %v721_v45 = vpack.c.bf16 %v70_v43, %v54_v42  ;;  %v67_v46 = vld [vmem:[%s1018_s0 + $0x1a0] sm:$0xff]  ;;  %v53_v47 = vld [vmem:[%s1018_s0 + $0x130] sm:$0xff]  ;;  %v24_v49 = vld [vmem:[%s1018_s0 + $0x48] sm:$0xff] }
   0xc   :  { %718 = vmatprep.subr.bf16.mxu1 %v717_v32  ;;  %v69_v48 = vld [vmem:[%s1018_s0 + $0x1b0] sm:$0xff]  ;;  %v40_v50 = vld [vmem:[%s1018_s0 + $0xc8] sm:$0xff]  ;;  %v26_v51 = vld [vmem:[%s1018_s0 + $0x58] sm:$0xff]  ;;  %v715_v52 = vpack.c.bf16 %v67_v46, %v51_v44 }
   0xd   :  { %685 = vmatmul.mubr.msk.f32.vlgmr.msra.gmra.mrb[0].mxu0 %vm79_vm0, %v838_v27  ;;  %v42_v53 = vld [vmem:[%s1018_s0 + $0xd8] sm:$0xff]  ;;  %v723_v54 = vpack.c.bf16 %v69_v48, %v53_v47  ;;  %v725_v55 = vpack.c.bf16 %v40_v50, %v24_v49  ;;  %v23_v56 = vld [vmem:[%s1018_s0 + $0x40] sm:$0xff]  ;;  %v25_v58 = vld [vmem:[%s1018_s0 + $0x50] sm:$0xff] }
   0xe   :  { %686 = vmatmul.mubr.msk.f32.vlgmr.msra.gmra.mrb[0].mxu1 %vm79_vm0, %v838_v27  ;;  %712 = vmatpush1.bf16.msra.mxu0 %v711_v36  ;;  %v39_v57 = vld [vmem:[%s1018_s0 + $0xc0] sm:$0xff]  ;;  %v733_v59 = vpack.c.bf16 %v42_v53, %v26_v51  ;;  %v41_v60 = vld [vmem:[%s1018_s0 + $0xd0] sm:$0xff]  ;;  %v56_v61 = vld [vmem:[%s1018_s0 + $0x148] sm:$0xff] }
   0xf   :  { %720 = vmatpush1.bf16.msra.mxu1 %v719_v40  ;;  %714 = vmatprep.subr.bf16.mxu0 %v713_v41  ;;  %v72_v62 = vld [vmem:[%s1018_s0 + $0x1c8] sm:$0xff]  ;;  %v58_v63 = vld [vmem:[%s1018_s0 + $0x158] sm:$0xff]  ;;  %v727_v1 = vpack.c.bf16 %v39_v57, %v23_v56  ;;  %v735_v2 = vpack.c.bf16 %v41_v60, %v25_v58  ;;  %v55_v5 = vld [vmem:[%s1018_s0 + $0x140] sm:$0xff] }
  0x10   :  { %722 = vmatprep.subr.bf16.mxu1 %v721_v45  ;;  %289 = vmatprep.mubr.f32.mxu0 %v760_v3  ;;  %v74_v0 = vld [vmem:[%s1018_s0 + $0x1d8] sm:$0xff]  ;;  %v729_v4 = vpack.c.bf16 %v72_v62, %v56_v61  ;;  %v71_v6 = vld [vmem:[%s1018_s0 + $0x1c0] sm:$0xff]  ;;  %v57_v7 = vld [vmem:[%s1018_s0 + $0x150] sm:$0xff] }
  0x11   :  { %360 = vmatprep.mubr.f32.mxu1 %v760_v3  ;;  %v737_v8 = vpack.c.bf16 %v74_v0, %v58_v63  ;;  %v73_v9 = vld [vmem:[%s1018_s0 + $0x1d0] sm:$0xff]  ;;  %v28_v10 = vld [vmem:[%s1018_s0 + $0x68] sm:$0xff]  ;;  %v30_v12 = vld [vmem:[%s1018_s0 + $0x78] sm:$0xff]  ;;  %v731_v14 = vpack.c.bf16 %v71_v6, %v55_v5 }
  0x12   :  { %716 = vmatpush1.bf16.msra.mxu0 %v715_v52  ;;  %v44_v11 = vld [vmem:[%s1018_s0 + $0xe8] sm:$0xff]  ;;  %v46_v13 = vld [vmem:[%s1018_s0 + $0xf8] sm:$0xff]  ;;  %v27_v15 = vld [vmem:[%s1018_s0 + $0x60] sm:$0xff]  ;;  %v739_v16 = vpack.c.bf16 %v73_v9, %v57_v7 }
  0x13   :  { %724 = vmatpush1.bf16.msra.mxu1 %v723_v54  ;;  %726 = vmatprep.subr.bf16.mxu0 %v725_v55  ;;  %v741_v17 = vpack.c.bf16 %v44_v11, %v28_v10  ;;  %v43_v18 = vld [vmem:[%s1018_s0 + $0xe0] sm:$0xff]  ;;  %v29_v19 = vld [vmem:[%s1018_s0 + $0x70] sm:$0xff]  ;;  %v749_v21 = vpack.c.bf16 %v46_v13, %v30_v12  ;;  %v60_v23 = vld [vmem:[%s1018_s0 + $0x168] sm:$0xff] }
  0x14   :  { %734 = vmatprep.subr.bf16.mxu1 %v733_v59  ;;  %v663_v20 = vld [vmem:[%s1020_s2] sm:$0xff]  ;;  %v45_v22 = vld [vmem:[%s1018_s0 + $0xf0] sm:$0xff]  ;;  %v76_v24 = vld [vmem:[%s1018_s0 + $0x1e8] sm:$0xff]  ;;  %v743_v28 = vpack.c.bf16 %v43_v18, %v27_v15 }
  0x15   :  { %687 = vmatmul.mubr.msk.f32.vlgmr.msra.gmra.mrb[2].mxu0 %vm79_vm0, %v838_v27  ;;  %v62_v25 = vld [vmem:[%s1018_s0 + $0x178] sm:$0xff]  ;;  %666 = vperm.xlu0 %759, %v663_v20   ;;  %v751_v29 = vpack.c.bf16 %v45_v22, %v29_v19  ;;  %v745_v30 = vpack.c.bf16 %v76_v24, %v60_v23  ;;  %v59_v31 = vld [vmem:[%s1018_s0 + $0x160] sm:$0xff]  ;;  %v61_v34 = vld [vmem:[%s1018_s0 + $0x170] sm:$0xff] }
  0x16   :  { %688 = vmatmul.mubr.msk.f32.vlgmr.msra.gmra.mrb[2].mxu1 %vm79_vm0, %v838_v27  ;;  %728 = vmatpush1.bf16.msra.mxu0 %v727_v1  ;;  %v78_v26 = vld [vmem:[%s1018_s0 + $0x1f8] sm:$0xff]  ;;  %v75_v32 = vld [vmem:[%s1018_s0 + $0x1e0] sm:$0xff]  ;;  %v77_v35 = vld [vmem:[%s1018_s0 + $0x1f0] sm:$0xff] }
  0x17   :  { %736 = vmatpush1.bf16.msra.mxu1 %v735_v2  ;;  %730 = vmatprep.subr.bf16.mxu0 %v729_v4  ;;  %v753_v33 = vpack.c.bf16 %v78_v26, %v62_v25  ;;  %v747_v36 = vpack.c.bf16 %v75_v32, %v59_v31  ;;  %v755_v37 = vpack.c.bf16 %v77_v35, %v61_v34 }
  0x18   :  { %738 = vmatprep.subr.bf16.mxu1 %v737_v8  ;;  %431 = vmatprep.mubr.f32.mxu0 %v760_v3 }
  0x19   :  { %502 = vmatprep.mubr.f32.mxu1 %v760_v3 }
  0x1a   :  { %732 = vmatpush1.bf16.msra.mxu0 %v731_v14 }
  0x1b   :  { %740 = vmatpush1.bf16.msra.mxu1 %v739_v16  ;;  %742 = vmatprep.subr.bf16.mxu0 %v741_v17 }
  0x1c   :  { %750 = vmatprep.subr.bf16.mxu1 %v749_v21 }
  0x1d   :  { %689 = vmatmul.mubr.msk.f32.vlgmr.msra.gmra.mrb[4].mxu0 %vm79_vm0, %v838_v27 }
  0x1e   :  { %690 = vmatmul.mubr.msk.f32.vlgmr.msra.gmra.mrb[4].mxu1 %vm79_vm0, %v838_v27  ;;  %744 = vmatpush1.bf16.msra.mxu0 %v743_v28 }
  0x1f   :  { %752 = vmatpush1.bf16.msra.mxu1 %v751_v29  ;;  %746 = vmatprep.subr.bf16.mxu0 %v745_v30 }
  0x20   :  { %754 = vmatprep.subr.bf16.mxu1 %v753_v33  ;;  %573 = vmatprep.mubr.f32.mxu0 %v760_v3 }
  0x21   :  { %644 = vmatprep.mubr.f32.mxu1 %v760_v3 }
  0x22   :  { %748 = vmatpush1.bf16.msra.mxu0 %v747_v36 }
  0x23   :  { %756 = vmatpush1.bf16.msra.mxu1 %v755_v37 }
  0x25   :  { %691 = vmatmul.mubr.msk.f32.vlgmr.msra.gmra.mrb[6].mxu0 %vm79_vm0, %v838_v27 }
  0x26   :  { %692 = vmatmul.mubr.msk.f32.vlgmr.msra.gmra.mrb[6].mxu1 %vm79_vm0, %v838_v27 }
  0x94   :  { %v667_v59 = vpop.permute.xlu0 %666 }
  0xe0   :  { %v149_v38 = vpop.f32.mrb[0].mxu0 }
  0xe1   :  { %v220_v39 = vpop.f32.mrb[0].mxu1  ;;  %v151_v40 = vpop.f32.mrb[1].mxu0 }
  0xe2   :  { %v222_v41 = vpop.f32.mrb[1].mxu1 }
  0xe8   :  { %v291_v42 = vpop.f32.mrb[2].mxu0 }
  0xe9   :  { %v651_v43 = vmax.f32 %v149_v38, %v291_v42  ;;  %v362_v44 = vpop.f32.mrb[2].mxu1  ;;  %v293_v45 = vpop.f32.mrb[3].mxu0 }
  0xea   :  { %v653_v46 = vmax.f32 %v220_v39, %v362_v44  ;;  %v652_v47 = vmax.f32 %v151_v40, %v293_v45  ;;  %v364_v48 = vpop.f32.mrb[3].mxu1 }
  0xeb   :  { %v654_v3 = vmax.f32 %v222_v41, %v364_v48 }
  0xf0   :  { %v433_v49 = vpop.f32.mrb[4].mxu0 }
  0xf1   :  { %v504_v50 = vpop.f32.mrb[4].mxu1  ;;  %v435_v51 = vpop.f32.mrb[5].mxu0 }
  0xf2   :  { %v506_v52 = vpop.f32.mrb[5].mxu1 }
  0xf8   :  { %v575_v53 = vpop.f32.mrb[6].mxu0 }
  0xf9   :  { %v655_v54 = vmax.f32 %v433_v49, %v575_v53  ;;  %v646_v55 = vpop.f32.mrb[6].mxu1  ;;  %v577_v27 = vpop.f32.mrb[7].mxu0 }
  0xfa   :  { %v657_v56 = vmax.f32 %v504_v50, %v646_v55  ;;  %v656_v57 = vmax.f32 %v435_v51, %v577_v27  ;;  %v648_v58 = vpop.f32.mrb[7].mxu1 }
  0xfb   :  { %v659_v60 = vmax.f32 %v651_v43, %v655_v54  ;;  %v658_v61 = vmax.f32 %v506_v52, %v648_v58 }
  0xfc   :  { %v661_v62 = vmax.f32 %v653_v46, %v657_v56  ;;  %v660_v63 = vmax.f32 %v652_v47, %v656_v57 }
  0xfd   :  { %v662_v0 = vmax.f32 %v654_v3, %v658_v61  ;;  %v669_v1 = vadd.f32 %v667_v59, %v659_v60 }
  0xfe   :  { %v670_v2 = vadd.f32 %v667_v59, %v660_v63  ;;  %v671_v4 = vadd.f32 %v667_v59, %v661_v62 }
  0xff   :  { %v672_v5 = vadd.f32 %v667_v59, %v662_v0  ;;  %v673_v6 = vmax.f32 %v669_v1, 0.0 }
 0x100   :  { %v674_v7 = vmax.f32 %v670_v2, 0.0  ;;  %v675_v8 = vmax.f32 %v671_v4, 0.0 }
 0x101   :  { %v676_v9 = vmax.f32 %v672_v5, 0.0  ;;  %677 = vst [vmem:[%s1021_s3] sm:$0xff] %v673_v6 }
 0x102   :  { %678 = vst [vmem:[%s1021_s3 + $0x8] sm:$0xff] %v674_v7  ;;  %679 = vst [vmem:[%s1021_s3 + $0x10] sm:$0xff] %v675_v8 }
 0x103   :  { %680 = vst [vmem:[%s1021_s3 + $0x18] sm:$0xff] %v676_v9 }

// kernel: net_forward.3
= control target key start
LH: loop header
LB: loop body
LE: loop exit
PB: predicated region body
PF: predicated region fallthrough
CT: control target
= control target key end

     0   :  { %v6053_v3 = vmov 0.0|0.0   ;;  %vm308_vm0 = vcmask 195584   ;;  %v6055_v30 = vmov 0.0   ;;  %s6043_s0 = inlined_call_operand.vmem [shape: f32[1024,152], index: 0, kind: input, shape index: {}]   ;;  %s6044_s1 = inlined_call_operand.vmem [shape: f32[152,16], index: 1, kind: input, shape index: {}]   ;;  %s6045_s2 = inlined_call_operand.vmem [shape: f32[1,16], index: 2, kind: input, shape index: {}]   ;;  %s6046_s3 = inlined_call_operand.vmem [shape: f32[400,120], index: 3, kind: input, shape index: {}]   ;;  %s6047_s4 = inlined_call_operand.vmem [shape: f32[1,120], index: 4, kind: input, shape index: {}]   ;;  %s6048_s5 = inlined_call_operand.vmem [shape: f32[120,84], index: 5, kind: input, shape index: {}]   ;;  %s6049_s6 = inlined_call_operand.vmem [shape: f32[1,84], index: 6, kind: input, shape index: {}]   ;;  %s6050_s7 = inlined_call_operand.vmem [shape: f32[84,10], index: 7, kind: input, shape index: {}]   ;;  %s6051_s8 = inlined_call_operand.vmem [shape: f32[1,10], index: 8, kind: input, shape index: {}]   ;;  %s6052_s9 = inlined_call_operand.hbm [shape: f32[2,10], index: 9, kind: output, shape index: {}]  }
   0x1   :  { %v289_v0 = vld [vmem:[%s6044_s1] sm:$0xff]  ;;  %v290_v1 = vld [vmem:[%s6044_s1 + $0x8] sm:$0xff]  ;;  %v291_v2 = vld [vmem:[%s6044_s1 + $0x10] sm:$0xff]  ;;  %4115 = vmatprep.subr.bf16.mxu0 %v6053_v3  ;;  %4253 = vmatprep.subr.bf16.mxu1 %v6053_v3 }
   0x2   :  { %v4116_v4 = vpack.c.bf16 %v290_v1, %v289_v0  ;;  %v292_v5 = vld [vmem:[%s6044_s1 + $0x18] sm:$0xff]  ;;  %v293_v7 = vld [vmem:[%s6044_s1 + $0x20] sm:$0xff]  ;;  %v294_v8 = vld [vmem:[%s6044_s1 + $0x28] sm:$0xff] }
   0x3   :  { %v4119_v6 = vpack.c.bf16 %v292_v5, %v291_v2  ;;  %v34_v9 = vld [vmem:[%s6043_s0 + $0x8] sm:$0xff]  ;;  %v4122_v10 = vpack.c.bf16 %v294_v8, %v293_v7  ;;  %v295_v11 = vld [vmem:[%s6044_s1 + $0x30] sm:$0xff]  ;;  %v296_v12 = vld [vmem:[%s6044_s1 + $0x38] sm:$0xff] }
   0x4   :  { %4117 = vmatpush1.bf16.msra.mxu0 %v4116_v4  ;;  %4263 = vmatpush1.bf16.msra.mxu1 %v4116_v4  ;;  %v4125_v13 = vpack.c.bf16 %v296_v12, %v295_v11  ;;  %v297_v14 = vld [vmem:[%s6044_s1 + $0x40] sm:$0xff]  ;;  %v298_v15 = vld [vmem:[%s6044_s1 + $0x48] sm:$0xff]  ;;  %v299_v17 = vld [vmem:[%s6044_s1 + $0x50] sm:$0xff] }
   0x5   :  { %4118 = vmatprep.subr.bf16.mxu0 %v6053_v3  ;;  %4254 = vmatprep.subr.bf16.mxu1 %v6053_v3  ;;  %v4128_v16 = vpack.c.bf16 %v298_v15, %v297_v14  ;;  %v300_v18 = vld [vmem:[%s6044_s1 + $0x58] sm:$0xff]  ;;  %v301_v21 = vld [vmem:[%s6044_s1 + $0x60] sm:$0xff]  ;;  %v302_v22 = vld [vmem:[%s6044_s1 + $0x68] sm:$0xff] }
   0x6   :  { %3619 = vmatprep.mubr.msk.f32.mxu0 %vm308_vm0, %v34_v9  ;;  %v4131_v19 = vpack.c.bf16 %v300_v18, %v299_v17  ;;  %v200_v20 = vld [vmem:[%s6043_s0 + $0x538] sm:$0xff]  ;;  %v4134_v23 = vpack.c.bf16 %v302_v22, %v301_v21  ;;  %v303_v24 = vld [vmem:[%s6044_s1 + $0x70] sm:$0xff]  ;;  %v305_v27 = vld [vmem:[%s6044_s1 + $0x80] sm:$0xff] }
   0x7   :  { %3702 = vmatprep.mubr.msk.f32.mxu1 %vm308_vm0, %v200_v20  ;;  %v304_v25 = vld [vmem:[%s6044_s1 + $0x78] sm:$0xff]  ;;  %v306_v28 = vld [vmem:[%s6044_s1 + $0x88] sm:$0xff]  ;;  %v307_v31 = vld [vmem:[%s6044_s1 + $0x90] sm:$0xff] }
   0x8   :  { %4120 = vmatpush1.bf16.msra.mxu0 %v4119_v6  ;;  %4264 = vmatpush1.bf16.msra.mxu1 %v4119_v6  ;;  %v4137_v26 = vpack.c.bf16 %v304_v25, %v303_v24  ;;  %v4140_v29 = vpack.c.bf16 %v306_v28, %v305_v27 }
   0x9   :  { %4121 = vmatprep.subr.bf16.mxu0 %v6053_v3  ;;  %4255 = vmatprep.subr.bf16.mxu1 %v6053_v3 }
   0xc   :  { %4123 = vmatpush1.bf16.msra.mxu0 %v4122_v10  ;;  %4265 = vmatpush1.bf16.msra.mxu1 %v4122_v10 }
   0xd   :  { %4124 = vmatprep.subr.bf16.mxu0 %v6053_v3  ;;  %4256 = vmatprep.subr.bf16.mxu1 %v6053_v3 }
  0x10   :  { %4126 = vmatpush1.bf16.msra.mxu0 %v4125_v13  ;;  %4266 = vmatpush1.bf16.msra.mxu1 %v4125_v13 }
  0x11   :  { %4127 = vmatprep.subr.bf16.mxu0 %v6053_v3  ;;  %4257 = vmatprep.subr.bf16.mxu1 %v6053_v3 }
  0x14   :  { %4129 = vmatpush1.bf16.msra.mxu0 %v4128_v16  ;;  %4267 = vmatpush1.bf16.msra.mxu1 %v4128_v16 }
  0x15   :  { %4130 = vmatprep.subr.bf16.mxu0 %v6053_v3  ;;  %4258 = vmatprep.subr.bf16.mxu1 %v6053_v3 }
  0x18   :  { %4132 = vmatpush1.bf16.msra.mxu0 %v4131_v19  ;;  %4268 = vmatpush1.bf16.msra.mxu1 %v4131_v19 }
  0x19   :  { %4133 = vmatprep.subr.bf16.mxu0 %v6053_v3  ;;  %4259 = vmatprep.subr.bf16.mxu1 %v6053_v3 }
  0x1c   :  { %4135 = vmatpush1.bf16.msra.mxu0 %v4134_v23  ;;  %4269 = vmatpush1.bf16.msra.mxu1 %v4134_v23 }
  0x1d   :  { %4136 = vmatprep.subr.bf16.mxu0 %v6053_v3  ;;  %4260 = vmatprep.subr.bf16.mxu1 %v6053_v3 }
  0x20   :  { %4138 = vmatpush1.bf16.msra.mxu0 %v4137_v26  ;;  %4270 = vmatpush1.bf16.msra.mxu1 %v4137_v26 }
  0x21   :  { %4139 = vmatprep.subr.bf16.mxu0 %v6053_v3  ;;  %4261 = vmatprep.subr.bf16.mxu1 %v6053_v3 }
  0x24   :  { %4141 = vmatpush1.bf16.msra.mxu0 %v4140_v29  ;;  %4271 = vmatpush1.bf16.msra.mxu1 %v4140_v29 }
  0x25   :  { %729 = vmatprep.subr.mxu0 %v6055_v30 }
  0x26   :  { %14 = vsyncpa [#allocation3], 0  ;;  %v33_v32 = vld [vmem:[%s6043_s0] sm:$0xff]  ;;  %4262 = vmatprep.subr.mxu1 %v6055_v30  ;;  %v36_v33 = vld [vmem:[%s6043_s0 + $0x18] sm:$0xff]  ;;  %vm4303_vm1 = vmmov 0   ;;  %vm1552_vm2 = vcmask 130048  }
  0x27   :  { %v199_v34 = vld [vmem:[%s6043_s0 + $0x530] sm:$0xff]  ;;  %v202_v35 = vld [vmem:[%s6043_s0 + $0x548] sm:$0xff]  ;;  %v201_v38 = vld [vmem:[%s6043_s0 + $0x540] sm:$0xff]  ;;  %vm3432_vm3 = vcmask 982016   ;;  %vm3529_vm4 = vcmask 1043456   ;;  %vm3525_vm5 = vcmask 687104  }
  0x28   :  { %730 = vmatpush1.msra.mxu0 %v307_v31  ;;  %4272 = vmatpush1.msra.mxu1 %v307_v31  ;;  %v35_v36 = vld [vmem:[%s6043_s0 + $0x10] sm:$0xff]  ;;  %v38_v37 = vld [vmem:[%s6043_s0 + $0x28] sm:$0xff]  ;;  %v204_v39 = vld [vmem:[%s6043_s0 + $0x558] sm:$0xff]  ;;  %s4304_s19 = smov [#allocation2]   ;;  %vm3603_vm6 = vcmask 74752  }
  0x29   :  { %758 = vmatmul.mubr.f32.vlgmr.msra.gmra.mrb[0].mxu0 %v33_v32  ;;  %1159 = vmatmul.mubr.f32.vlgmr.msra.gmra.mrb[0].mxu1 %v199_v34  ;;  %v37_v40 = vld [vmem:[%s6043_s0 + $0x20] sm:$0xff]  ;;  %v40_v41 = vld [vmem:[%s6043_s0 + $0x38] sm:$0xff]  ;;  %v203_v42 = vld [vmem:[%s6043_s0 + $0x550] sm:$0xff]  ;;  %s3611_s20 = sshll.u32 %s4304_s19, 4  ;;  %s3612_s20 = int_to_ptr.vmem [resolvable:$true] %s3611_s20 }
  0x2a   :  { %3620 = vmatprep.mubr.msk.f32.mxu0 %vm308_vm0, %v36_v33  ;;  %3703 = vmatprep.mubr.msk.f32.mxu1 %vm308_vm0, %v202_v35  ;;  %v206_v43 = vld [vmem:[%s6043_s0 + $0x568] sm:$0xff]  ;;  %v39_v44 = vld [vmem:[%s6043_s0 + $0x30] sm:$0xff]  ;;  %v205_v46 = vld [vmem:[%s6043_s0 + $0x560] sm:$0xff]  ;;  %p4282_p1 = scmp.lt.s32.totalorder %s3612_s20, %s3612_s20 }
  0x2b   :  { %4142 = vmatprep.subr.bf16.mxu1 %v6053_v3  ;;  %v42_v45 = vld [vmem:[%s6043_s0 + $0x48] sm:$0xff]  ;;  %v208_v47 = vld [vmem:[%s6043_s0 + $0x578] sm:$0xff]  ;;  %v41_v48 = vld [vmem:[%s6043_s0 + $0x40] sm:$0xff] }
  0x2c   :  { %v44_v49 = vld [vmem:[%s6043_s0 + $0x58] sm:$0xff]  ;;  %v207_v50 = vld [vmem:[%s6043_s0 + $0x570] sm:$0xff]  ;;  %v210_v51 = vld [vmem:[%s6043_s0 + $0x588] sm:$0xff] }
  0x2d   :  { %763 = vmatmul.mubr.f32.gmra.mrb[2].mxu0 %v35_v36  ;;  %1164 = vmatmul.mubr.f32.gmra.mrb[2].mxu1 %v201_v38  ;;  %v43_v52 = vld [vmem:[%s6043_s0 + $0x50] sm:$0xff]  ;;  %v46_v53 = vld [vmem:[%s6043_s0 + $0x68] sm:$0xff]  ;;  %v209_v54 = vld [vmem:[%s6043_s0 + $0x580] sm:$0xff] }
  0x2e   :  { %3621 = vmatprep.mubr.msk.f32.mxu0 %vm308_vm0, %v38_v37  ;;  %3704 = vmatprep.mubr.msk.f32.mxu1 %vm308_vm0, %v204_v39  ;;  %v212_v55 = vld [vmem:[%s6043_s0 + $0x598] sm:$0xff]  ;;  %v45_v56 = vld [vmem:[%s6043_s0 + $0x60] sm:$0xff]  ;;  %v211_v58 = vld [vmem:[%s6043_s0 + $0x590] sm:$0xff] }
  0x2f   :  { %v48_v57 = vld [vmem:[%s6043_s0 + $0x78] sm:$0xff]  ;;  %v214_v59 = vld [vmem:[%s6043_s0 + $0x5a8] sm:$0xff]  ;;  %v47_v60 = vld [vmem:[%s6043_s0 + $0x70] sm:$0xff] }
  0x30   :  { %v50_v61 = vld [vmem:[%s6043_s0 + $0x88] sm:$0xff]  ;;  %v213_v62 = vld [vmem:[%s6043_s0 + $0x5a0] sm:$0xff]  ;;  %v216_v63 = vld [vmem:[%s6043_s0 + $0x5b8] sm:$0xff] }
  0x31   :  { %768 = vmatmul.mubr.f32.gmra.mrb[4].mxu0 %v37_v40  ;;  %1169 = vmatmul.mubr.f32.gmra.mrb[4].mxu1 %v203_v42  ;;  %v49_v0 = vld [vmem:[%s6043_s0 + $0x80] sm:$0xff]  ;;  %v52_v1 = vld [vmem:[%s6043_s0 + $0x98] sm:$0xff]  ;;  %v215_v2 = vld [vmem:[%s6043_s0 + $0x5b0] sm:$0xff] }
  0x32   :  { %3622 = vmatprep.mubr.msk.f32.mxu0 %vm308_vm0, %v40_v41  ;;  %3705 = vmatprep.mubr.msk.f32.mxu1 %vm308_vm0, %v206_v43  ;;  %v218_v4 = vld [vmem:[%s6043_s0 + $0x5c8] sm:$0xff]  ;;  %v51_v5 = vld [vmem:[%s6043_s0 + $0x90] sm:$0xff]  ;;  %v217_v7 = vld [vmem:[%s6043_s0 + $0x5c0] sm:$0xff] }
  0x33   :  { %v54_v6 = vld [vmem:[%s6043_s0 + $0xa8] sm:$0xff]  ;;  %v220_v8 = vld [vmem:[%s6043_s0 + $0x5d8] sm:$0xff]  ;;  %v53_v9 = vld [vmem:[%s6043_s0 + $0xa0] sm:$0xff] }
  0x34   :  { %v56_v10 = vld [vmem:[%s6043_s0 + $0xb8] sm:$0xff]  ;;  %v219_v11 = vld [vmem:[%s6043_s0 + $0x5d0] sm:$0xff]  ;;  %v222_v12 = vld [vmem:[%s6043_s0 + $0x5e8] sm:$0xff] }
  0x35   :  { %773 = vmatmul.mubr.f32.gmra.mrb[6].mxu0 %v39_v44  ;;  %1174 = vmatmul.mubr.f32.gmra.mrb[6].mxu1 %v205_v46  ;;  %v55_v13 = vld [vmem:[%s6043_s0 + $0xb0] sm:$0xff]  ;;  %v58_v14 = vld [vmem:[%s6043_s0 + $0xc8] sm:$0xff]  ;;  %v221_v15 = vld [vmem:[%s6043_s0 + $0x5e0] sm:$0xff] }
  0x36   :  { %3623 = vmatprep.mubr.msk.f32.mxu0 %vm308_vm0, %v42_v45  ;;  %3706 = vmatprep.mubr.msk.f32.mxu1 %vm308_vm0, %v208_v47  ;;  %v224_v16 = vld [vmem:[%s6043_s0 + $0x5f8] sm:$0xff]  ;;  %v57_v17 = vld [vmem:[%s6043_s0 + $0xc0] sm:$0xff]  ;;  %v223_v19 = vld [vmem:[%s6043_s0 + $0x5f0] sm:$0xff] }
  0x37   :  { %v60_v18 = vld [vmem:[%s6043_s0 + $0xd8] sm:$0xff]  ;;  %v226_v20 = vld [vmem:[%s6043_s0 + $0x608] sm:$0xff]  ;;  %v59_v21 = vld [vmem:[%s6043_s0 + $0xd0] sm:$0xff] }
  0x38   :  { %v62_v22 = vld [vmem:[%s6043_s0 + $0xe8] sm:$0xff]  ;;  %v225_v23 = vld [vmem:[%s6043_s0 + $0x600] sm:$0xff]  ;;  %v228_v24 = vld [vmem:[%s6043_s0 + $0x618] sm:$0xff] }
  0x39   :  { %778 = vmatmul.mubr.f32.gmra.mrb[8].mxu0 %v41_v48  ;;  %1179 = vmatmul.mubr.f32.gmra.mrb[8].mxu1 %v207_v50  ;;  %v61_v25 = vld [vmem:[%s6043_s0 + $0xe0] sm:$0xff]  ;;  %v64_v26 = vld [vmem:[%s6043_s0 + $0xf8] sm:$0xff]  ;;  %v227_v27 = vld [vmem:[%s6043_s0 + $0x610] sm:$0xff] }
  0x3a   :  { %3624 = vmatprep.mubr.msk.f32.mxu0 %vm308_vm0, %v44_v49  ;;  %3707 = vmatprep.mubr.msk.f32.mxu1 %vm308_vm0, %v210_v51  ;;  %v230_v28 = vld [vmem:[%s6043_s0 + $0x628] sm:$0xff]  ;;  %v63_v29 = vld [vmem:[%s6043_s0 + $0xf0] sm:$0xff]  ;;  %v229_v32 = vld [vmem:[%s6043_s0 + $0x620] sm:$0xff] }
  0x3b   :  { %v66_v31 = vld [vmem:[%s6043_s0 + $0x108] sm:$0xff]  ;;  %v232_v33 = vld [vmem:[%s6043_s0 + $0x638] sm:$0xff]  ;;  %v65_v34 = vld [vmem:[%s6043_s0 + $0x100] sm:$0xff] }
  0x3c   :  { %v68_v35 = vld [vmem:[%s6043_s0 + $0x118] sm:$0xff]  ;;  %v231_v36 = vld [vmem:[%s6043_s0 + $0x630] sm:$0xff]  ;;  %v234_v37 = vld [vmem:[%s6043_s0 + $0x648] sm:$0xff] }
  0x3d   :  { %783 = vmatmul.mubr.f32.gmra.mrb[10].mxu0 %v43_v52  ;;  %1184 = vmatmul.mubr.f32.gmra.mrb[10].mxu1 %v209_v54  ;;  %v67_v38 = vld [vmem:[%s6043_s0 + $0x110] sm:$0xff]  ;;  %v70_v39 = vld [vmem:[%s6043_s0 + $0x128] sm:$0xff]  ;;  %v233_v40 = vld [vmem:[%s6043_s0 + $0x640] sm:$0xff] }
  0x3e   :  { %3625 = vmatprep.mubr.msk.f32.mxu0 %vm308_vm0, %v46_v53  ;;  %3708 = vmatprep.mubr.msk.f32.mxu1 %vm308_vm0, %v212_v55  ;;  %v236_v41 = vld [vmem:[%s6043_s0 + $0x658] sm:$0xff]  ;;  %v69_v42 = vld [vmem:[%s6043_s0 + $0x120] sm:$0xff]  ;;  %v235_v44 = vld [vmem:[%s6043_s0 + $0x650] sm:$0xff] }
  0x3f   :  { %v72_v43 = vld [vmem:[%s6043_s0 + $0x138] sm:$0xff]  ;;  %v238_v45 = vld [vmem:[%s6043_s0 + $0x668] sm:$0xff]  ;;  %v71_v46 = vld [vmem:[%s6043_s0 + $0x130] sm:$0xff] }
  0x40   :  { %v74_v47 = vld [vmem:[%s6043_s0 + $0x148] sm:$0xff]  ;;  %v237_v48 = vld [vmem:[%s6043_s0 + $0x660] sm:$0xff]  ;;  %v240_v49 = vld [vmem:[%s6043_s0 + $0x678] sm:$0xff] }
  0x41   :  { %788 = vmatmul.mubr.f32.gmra.mrb[12].mxu0 %v45_v56  ;;  %1189 = vmatmul.mubr.f32.gmra.mrb[12].mxu1 %v211_v58  ;;  %v73_v50 = vld [vmem:[%s6043_s0 + $0x140] sm:$0xff]  ;;  %v76_v51 = vld [vmem:[%s6043_s0 + $0x158] sm:$0xff]  ;;  %v239_v52 = vld [vmem:[%s6043_s0 + $0x670] sm:$0xff] }
  0x42   :  { %3626 = vmatprep.mubr.msk.f32.mxu0 %vm308_vm0, %v48_v57  ;;  %3709 = vmatprep.mubr.msk.f32.mxu1 %vm308_vm0, %v214_v59  ;;  %v242_v53 = vld [vmem:[%s6043_s0 + $0x688] sm:$0xff]  ;;  %v75_v54 = vld [vmem:[%s6043_s0 + $0x150] sm:$0xff]  ;;  %v241_v56 = vld [vmem:[%s6043_s0 + $0x680] sm:$0xff] }
  0x43   :  { %v78_v55 = vld [vmem:[%s6043_s0 + $0x168] sm:$0xff]  ;;  %v244_v57 = vld [vmem:[%s6043_s0 + $0x698] sm:$0xff]  ;;  %v77_v58 = vld [vmem:[%s6043_s0 + $0x160] sm:$0xff] }
  0x44   :  { %v80_v59 = vld [vmem:[%s6043_s0 + $0x178] sm:$0xff] }
  0x45   :  { %793 = vmatmul.mubr.f32.gmra.mrb[14].mxu0 %v47_v60  ;;  %1193 = vmatmul.mubr.f32.gmra.mrb[14].mxu1 %v213_v62  ;;  %v243_v60 = vld [vmem:[%s6043_s0 + $0x690] sm:$0xff] }
  0x46   :  { %3627 = vmatprep.mubr.msk.f32.mxu0 %vm308_vm0, %v50_v61  ;;  %3710 = vmatprep.mubr.msk.f32.mxu1 %vm308_vm0, %v216_v63  ;;  %v246_v61 = vld [vmem:[%s6043_s0 + $0x6a8] sm:$0xff]  ;;  %v79_v62 = vld [vmem:[%s6043_s0 + $0x170] sm:$0xff] }
  0x47   :  { %v82_v63 = vld [vmem:[%s6043_s0 + $0x188] sm:$0xff] }
  0x49   :  { %798 = vmatmul.mubr.f32.gmra.mrb[16].mxu0 %v49_v0  ;;  %1197 = vmatmul.mubr.f32.gmra.mrb[16].mxu1 %v215_v2  ;;  %v245_v0 = vld [vmem:[%s6043_s0 + $0x6a0] sm:$0xff] }
  0x4a   :  { %3628 = vmatprep.mubr.msk.f32.mxu0 %vm308_vm0, %v52_v1  ;;  %3711 = vmatprep.mubr.msk.f32.mxu1 %vm308_vm0, %v218_v4  ;;  %v248_v1 = vld [vmem:[%s6043_s0 + $0x6b8] sm:$0xff]  ;;  %v81_v2 = vld [vmem:[%s6043_s0 + $0x180] sm:$0xff] }
  0x4b   :  { %v84_v4 = vld [vmem:[%s6043_s0 + $0x198] sm:$0xff] }
  0x4d   :  { %803 = vmatmul.mubr.f32.gmra.mrb[18].mxu0 %v51_v5  ;;  %1201 = vmatmul.mubr.f32.gmra.mrb[18].mxu1 %v217_v7  ;;  %v247_v5 = vld [vmem:[%s6043_s0 + $0x6b0] sm:$0xff] }
  0x4e   :  { %3629 = vmatprep.mubr.msk.f32.mxu0 %vm308_vm0, %v54_v6  ;;  %3712 = vmatprep.mubr.msk.f32.mxu1 %vm308_vm0, %v220_v8  ;;  %v250_v6 = vld [vmem:[%s6043_s0 + $0x6c8] sm:$0xff]  ;;  %v83_v7 = vld [vmem:[%s6043_s0 + $0x190] sm:$0xff] }
  0x4f   :  { %v86_v8 = vld [vmem:[%s6043_s0 + $0x1a8] sm:$0xff] }
  0x51   :  { %808 = vmatmul.mubr.f32.gmra.mrb[20].mxu0 %v53_v9  ;;  %1205 = vmatmul.mubr.f32.gmra.mrb[20].mxu1 %v219_v11  ;;  %v249_v9 = vld [vmem:[%s6043_s0 + $0x6c0] sm:$0xff] }
  0x52   :  { %3630 = vmatprep.mubr.msk.f32.mxu0 %vm308_vm0, %v56_v10  ;;  %3713 = vmatprep.mubr.msk.f32.mxu1 %vm308_vm0, %v222_v12  ;;  %v252_v10 = vld [vmem:[%s6043_s0 + $0x6d8] sm:$0xff]  ;;  %v85_v11 = vld [vmem:[%s6043_s0 + $0x1a0] sm:$0xff] }
  0x53   :  { %v88_v12 = vld [vmem:[%s6043_s0 + $0x1b8] sm:$0xff] }
  0x55   :  { %813 = vmatmul.mubr.f32.gmra.mrb[22].mxu0 %v55_v13  ;;  %1209 = vmatmul.mubr.f32.gmra.mrb[22].mxu1 %v221_v15  ;;  %v251_v13 = vld [vmem:[%s6043_s0 + $0x6d0] sm:$0xff] }
  0x56   :  { %3631 = vmatprep.mubr.msk.f32.mxu0 %vm308_vm0, %v58_v14  ;;  %3714 = vmatprep.mubr.msk.f32.mxu1 %vm308_vm0, %v224_v16  ;;  %v254_v14 = vld [vmem:[%s6043_s0 + $0x6e8] sm:$0xff]  ;;  %v87_v15 = vld [vmem:[%s6043_s0 + $0x1b0] sm:$0xff] }
  0x57   :  { %v90_v16 = vld [vmem:[%s6043_s0 + $0x1c8] sm:$0xff] }
  0x59   :  { %818 = vmatmul.mubr.f32.gmra.mrb[24].mxu0 %v57_v17  ;;  %1213 = vmatmul.mubr.f32.gmra.mrb[24].mxu1 %v223_v19  ;;  %v253_v17 = vld [vmem:[%s6043_s0 + $0x6e0] sm:$0xff] }
  0x5a   :  { %3632 = vmatprep.mubr.msk.f32.mxu0 %vm308_vm0, %v60_v18  ;;  %3715 = vmatprep.mubr.msk.f32.mxu1 %vm308_vm0, %v226_v20  ;;  %v256_v18 = vld [vmem:[%s6043_s0 + $0x6f8] sm:$0xff]  ;;  %v89_v19 = vld [vmem:[%s6043_s0 + $0x1c0] sm:$0xff] }
  0x5b   :  { %v92_v20 = vld [vmem:[%s6043_s0 + $0x1d8] sm:$0xff] }
  0x5d   :  { %823 = vmatmul.mubr.f32.gmra.mrb[26].mxu0 %v59_v21  ;;  %1217 = vmatmul.mubr.f32.gmra.mrb[26].mxu1 %v225_v23  ;;  %v255_v21 = vld [vmem:[%s6043_s0 + $0x6f0] sm:$0xff] }
  0x5e   :  { %3633 = vmatprep.mubr.msk.f32.mxu0 %vm308_vm0, %v62_v22  ;;  %3716 = vmatprep.mubr.msk.f32.mxu1 %vm308_vm0, %v228_v24  ;;  %v258_v22 = vld [vmem:[%s6043_s0 + $0x708] sm:$0xff]  ;;  %v91_v23 = vld [vmem:[%s6043_s0 + $0x1d0] sm:$0xff] }
  0x5f   :  { %v94_v24 = vld [vmem:[%s6043_s0 + $0x1e8] sm:$0xff] }
  0x61   :  { %828 = vmatmul.mubr.f32.gmra.mrb[28].mxu0 %v61_v25  ;;  %1222 = vmatmul.mubr.f32.gmra.mrb[28].mxu1 %v227_v27  ;;  %v257_v25 = vld [vmem:[%s6043_s0 + $0x700] sm:$0xff] }
  0x62   :  { %3634 = vmatprep.mubr.msk.f32.mxu0 %vm308_vm0, %v64_v26  ;;  %3717 = vmatprep.mubr.msk.f32.mxu1 %vm308_vm0, %v230_v28  ;;  %v260_v26 = vld [vmem:[%s6043_s0 + $0x718] sm:$0xff]  ;;  %v93_v27 = vld [vmem:[%s6043_s0 + $0x1e0] sm:$0xff] }
  0x63   :  { %v96_v28 = vld [vmem:[%s6043_s0 + $0x1f8] sm:$0xff] }
  0x65   :  { %833 = vmatmul.mubr.f32.gmra.mrb[30].mxu0 %v63_v29  ;;  %1227 = vmatmul.mubr.f32.gmra.mrb[30].mxu1 %v229_v32  ;;  %v259_v29 = vld [vmem:[%s6043_s0 + $0x710] sm:$0xff] }
  0x66   :  { %3635 = vmatprep.mubr.msk.f32.mxu0 %vm308_vm0, %v66_v31  ;;  %3718 = vmatprep.mubr.msk.f32.mxu1 %vm308_vm0, %v232_v33  ;;  %v262_v31 = vld [vmem:[%s6043_s0 + $0x728] sm:$0xff]  ;;  %v95_v32 = vld [vmem:[%s6043_s0 + $0x1f0] sm:$0xff] }
  0x67   :  { %v98_v33 = vld [vmem:[%s6043_s0 + $0x208] sm:$0xff] }
  0x69   :  { %838 = vmatmul.mubr.f32.gmra.mrb[32].mxu0 %v65_v34  ;;  %1232 = vmatmul.mubr.f32.gmra.mrb[32].mxu1 %v231_v36  ;;  %v261_v34 = vld [vmem:[%s6043_s0 + $0x720] sm:$0xff] }
  0x6a   :  { %3636 = vmatprep.mubr.msk.f32.mxu0 %vm308_vm0, %v68_v35  ;;  %3719 = vmatprep.mubr.msk.f32.mxu1 %vm308_vm0, %v234_v37  ;;  %v264_v35 = vld [vmem:[%s6043_s0 + $0x738] sm:$0xff]  ;;  %v97_v36 = vld [vmem:[%s6043_s0 + $0x200] sm:$0xff] }
  0x6b   :  { %v100_v37 = vld [vmem:[%s6043_s0 + $0x218] sm:$0xff] }
  0x6d   :  { %843 = vmatmul.mubr.f32.gmra.mrb[34].mxu0 %v67_v38  ;;  %1237 = vmatmul.mubr.f32.gmra.mrb[34].mxu1 %v233_v40  ;;  %v263_v38 = vld [vmem:[%s6043_s0 + $0x730] sm:$0xff] }
  0x6e   :  { %3637 = vmatprep.mubr.msk.f32.mxu0 %vm308_vm0, %v70_v39  ;;  %3720 = vmatprep.mubr.msk.f32.mxu1 %vm308_vm0, %v236_v41  ;;  %v266_v39 = vld [vmem:[%s6043_s0 + $0x748] sm:$0xff]  ;;  %v99_v40 = vld [vmem:[%s6043_s0 + $0x210] sm:$0xff] }
  0x6f   :  { %v102_v41 = vld [vmem:[%s6043_s0 + $0x228] sm:$0xff] }
  0x71   :  { %848 = vmatmul.mubr.f32.gmra.mrb[36].mxu0 %v69_v42  ;;  %1242 = vmatmul.mubr.f32.gmra.mrb[36].mxu1 %v235_v44  ;;  %v265_v42 = vld [vmem:[%s6043_s0 + $0x740] sm:$0xff] }
  0x72   :  { %3638 = vmatprep.mubr.msk.f32.mxu0 %vm308_vm0, %v72_v43  ;;  %3721 = vmatprep.mubr.msk.f32.mxu1 %vm308_vm0, %v238_v45  ;;  %v268_v43 = vld [vmem:[%s6043_s0 + $0x758] sm:$0xff]  ;;  %v101_v44 = vld [vmem:[%s6043_s0 + $0x220] sm:$0xff] }
  0x73   :  { %v104_v45 = vld [vmem:[%s6043_s0 + $0x238] sm:$0xff] }
  0x75   :  { %853 = vmatmul.mubr.f32.gmra.mrb[38].mxu0 %v71_v46  ;;  %1247 = vmatmul.mubr.f32.gmra.mrb[38].mxu1 %v237_v48  ;;  %v267_v46 = vld [vmem:[%s6043_s0 + $0x750] sm:$0xff] }
  0x76   :  { %3639 = vmatprep.mubr.msk.f32.mxu0 %vm308_vm0, %v74_v47  ;;  %3722 = vmatprep.mubr.msk.f32.mxu1 %vm308_vm0, %v240_v49  ;;  %v270_v47 = vld [vmem:[%s6043_s0 + $0x768] sm:$0xff]  ;;  %v103_v48 = vld [vmem:[%s6043_s0 + $0x230] sm:$0xff] }
  0x77   :  { %v106_v49 = vld [vmem:[%s6043_s0 + $0x248] sm:$0xff] }
  0x79   :  { %858 = vmatmul.mubr.f32.gmra.mrb[40].mxu0 %v73_v50  ;;  %1252 = vmatmul.mubr.f32.gmra.mrb[40].mxu1 %v239_v52  ;;  %v269_v50 = vld [vmem:[%s6043_s0 + $0x760] sm:$0xff] }
  0x7a   :  { %3640 = vmatprep.mubr.msk.f32.mxu0 %vm308_vm0, %v76_v51  ;;  %3723 = vmatprep.mubr.msk.f32.mxu1 %vm308_vm0, %v242_v53  ;;  %v272_v51 = vld [vmem:[%s6043_s0 + $0x778] sm:$0xff]  ;;  %v105_v52 = vld [vmem:[%s6043_s0 + $0x240] sm:$0xff] }
  0x7b   :  { %v108_v53 = vld [vmem:[%s6043_s0 + $0x258] sm:$0xff] }
  0x7d   :  { %863 = vmatmul.mubr.f32.gmra.mrb[42].mxu0 %v75_v54  ;;  %1257 = vmatmul.mubr.f32.gmra.mrb[42].mxu1 %v241_v56  ;;  %v271_v54 = vld [vmem:[%s6043_s0 + $0x770] sm:$0xff] }
  0x7e   :  { %3641 = vmatprep.mubr.msk.f32.mxu0 %vm308_vm0, %v78_v55  ;;  %3724 = vmatprep.mubr.msk.f32.mxu1 %vm308_vm0, %v244_v57  ;;  %v274_v55 = vld [vmem:[%s6043_s0 + $0x788] sm:$0xff]  ;;  %v107_v56 = vld [vmem:[%s6043_s0 + $0x250] sm:$0xff] }
  0x7f   :  { %v110_v57 = vld [vmem:[%s6043_s0 + $0x268] sm:$0xff] }
  0x81   :  { %868 = vmatmul.mubr.f32.gmra.mrb[44].mxu0 %v77_v58  ;;  %1262 = vmatmul.mubr.f32.gmra.mrb[44].mxu1 %v243_v60  ;;  %v273_v58 = vld [vmem:[%s6043_s0 + $0x780] sm:$0xff]  ;;  %v112_v60 = vld [vmem:[%s6043_s0 + $0x278] sm:$0xff] }
  0x82   :  { %3642 = vmatprep.mubr.msk.f32.mxu0 %vm308_vm0, %v80_v59  ;;  %3725 = vmatprep.mubr.msk.f32.mxu1 %vm308_vm0, %v246_v61  ;;  %v109_v59 = vld [vmem:[%s6043_s0 + $0x260] sm:$0xff]  ;;  %v111_v61 = vld [vmem:[%s6043_s0 + $0x270] sm:$0xff] }
  0x85   :  { %873 = vmatmul.mubr.f32.gmra.mrb[46].mxu0 %v79_v62  ;;  %1267 = vmatmul.mubr.f32.gmra.mrb[46].mxu1 %v245_v0  ;;  %v114_v62 = vld [vmem:[%s6043_s0 + $0x288] sm:$0xff]  ;;  %v116_v0 = vld [vmem:[%s6043_s0 + $0x298] sm:$0xff] }
  0x86   :  { %3643 = vmatprep.mubr.msk.f32.mxu0 %vm308_vm0, %v82_v63  ;;  %3726 = vmatprep.mubr.msk.f32.mxu1 %vm308_vm0, %v248_v1  ;;  %v113_v63 = vld [vmem:[%s6043_s0 + $0x280] sm:$0xff]  ;;  %v115_v1 = vld [vmem:[%s6043_s0 + $0x290] sm:$0xff] }
  0x89   :  { %878 = vmatmul.mubr.f32.gmra.mrb[48].mxu0 %v81_v2  ;;  %1272 = vmatmul.mubr.f32.gmra.mrb[48].mxu1 %v247_v5  ;;  %v118_v2 = vld [vmem:[%s6043_s0 + $0x2a8] sm:$0xff]  ;;  %v120_v5 = vld [vmem:[%s6043_s0 + $0x2b8] sm:$0xff] }
  0x8a   :  { %3644 = vmatprep.mubr.msk.f32.mxu0 %vm308_vm0, %v84_v4  ;;  %3727 = vmatprep.mubr.msk.f32.mxu1 %vm308_vm0, %v250_v6  ;;  %v117_v4 = vld [vmem:[%s6043_s0 + $0x2a0] sm:$0xff]  ;;  %v119_v6 = vld [vmem:[%s6043_s0 + $0x2b0] sm:$0xff] }
  0x8d   :  { %883 = vmatmul.mubr.f32.gmra.mrb[50].mxu0 %v83_v7  ;;  %1277 = vmatmul.mubr.f32.gmra.mrb[50].mxu1 %v249_v9  ;;  %v122_v7 = vld [vmem:[%s6043_s0 + $0x2c8] sm:$0xff]  ;;  %v1505_v9 = vld [vmem:[%s6046_s3 + $0x18] sm:$0xff] }
  0x8e   :  { %3645 = vmatprep.mubr.msk.f32.mxu0 %vm308_vm0, %v86_v8  ;;  %3728 = vmatprep.mubr.msk.f32.mxu1 %vm308_vm0, %v252_v10  ;;  %v1504_v8 = vld [vmem:[%s6046_s3 + $0x10] sm:$0xff]  ;;  %v121_v10 = vld [vmem:[%s6043_s0 + $0x2c0] sm:$0xff] }
  0x91   :  { %887 = vmatmul.mubr.f32.gmra.mrb[52].mxu0 %v85_v11  ;;  %1282 = vmatmul.mubr.f32.gmra.mrb[52].mxu1 %v251_v13  ;;  %v4143_v11 = vpack.c.bf16 %v1505_v9, %v1504_v8  ;;  %v123_v13 = vld [vmem:[%s6043_s0 + $0x2d0] sm:$0xff]  ;;  %v153_v8 = vld [vmem:[%s6043_s0 + $0x3c0] sm:$0xff] }
  0x92   :  { %3646 = vmatprep.mubr.msk.f32.mxu0 %vm308_vm0, %v88_v12  ;;  %3729 = vmatprep.mubr.msk.f32.mxu1 %vm308_vm0, %v254_v14  ;;  %v124_v12 = vld [vmem:[%s6043_s0 + $0x2d8] sm:$0xff]  ;;  %v126_v14 = vld [vmem:[%s6043_s0 + $0x2e8] sm:$0xff] }
  0x93   :  { %4144 = vmatpush3.bf16.msra.mxu1 %v4143_v11 }
  0x94   :  { %4145 = vmatprep.subr.bf16.mxu1 %v6053_v3 }
  0x95   :  { %891 = vmatmul.mubr.f32.gmra.mrb[54].mxu0 %v87_v15  ;;  %1287 = vmatmul.mubr.f32.gmra.mrb[54].mxu1 %v253_v17  ;;  %v125_v15 = vld [vmem:[%s6043_s0 + $0x2e0] sm:$0xff]  ;;  %v127_v17 = vld [vmem:[%s6043_s0 + $0x2f0] sm:$0xff] }
  0x96   :  { %3647 = vmatprep.mubr.msk.f32.mxu0 %vm308_vm0, %v90_v16  ;;  %3730 = vmatprep.mubr.msk.f32.mxu1 %vm308_vm0, %v256_v18  ;;  %v128_v16 = vld [vmem:[%s6043_s0 + $0x2f8] sm:$0xff]  ;;  %v130_v18 = vld [vmem:[%s6043_s0 + $0x308] sm:$0xff] }
  0x99   :  { %895 = vmatmul.mubr.f32.gmra.mrb[56].mxu0 %v89_v19  ;;  %1292 = vmatmul.mubr.f32.gmra.mrb[56].mxu1 %v255_v21  ;;  %v129_v19 = vld [vmem:[%s6043_s0 + $0x300] sm:$0xff]  ;;  %v131_v21 = vld [vmem:[%s6043_s0 + $0x310] sm:$0xff] }
  0x9a   :  { %3648 = vmatprep.mubr.msk.f32.mxu0 %vm308_vm0, %v92_v20  ;;  %3731 = vmatprep.mubr.msk.f32.mxu1 %vm308_vm0, %v258_v22  ;;  %v132_v20 = vld [vmem:[%s6043_s0 + $0x318] sm:$0xff]  ;;  %v134_v22 = vld [vmem:[%s6043_s0 + $0x328] sm:$0xff] }
  0x9d   :  { %899 = vmatmul.mubr.f32.gmra.mrb[58].mxu0 %v91_v23  ;;  %1297 = vmatmul.mubr.f32.gmra.mrb[58].mxu1 %v257_v25  ;;  %v133_v23 = vld [vmem:[%s6043_s0 + $0x320] sm:$0xff]  ;;  %v135_v25 = vld [vmem:[%s6043_s0 + $0x330] sm:$0xff] }
  0x9e   :  { %3649 = vmatprep.mubr.msk.f32.mxu0 %vm308_vm0, %v94_v24  ;;  %3732 = vmatprep.mubr.msk.f32.mxu1 %vm308_vm0, %v260_v26  ;;  %v136_v24 = vld [vmem:[%s6043_s0 + $0x338] sm:$0xff]  ;;  %v138_v26 = vld [vmem:[%s6043_s0 + $0x348] sm:$0xff] }
  0xa1   :  { %903 = vmatmul.mubr.f32.gmra.mrb[60].mxu0 %v93_v27  ;;  %1302 = vmatmul.mubr.f32.gmra.mrb[60].mxu1 %v259_v29  ;;  %v137_v27 = vld [vmem:[%s6043_s0 + $0x340] sm:$0xff]  ;;  %v139_v29 = vld [vmem:[%s6043_s0 + $0x350] sm:$0xff] }
  0xa2   :  { %3650 = vmatprep.mubr.msk.f32.mxu0 %vm308_vm0, %v96_v28  ;;  %3733 = vmatprep.mubr.msk.f32.mxu1 %vm308_vm0, %v262_v31  ;;  %v140_v28 = vld [vmem:[%s6043_s0 + $0x358] sm:$0xff]  ;;  %v142_v31 = vld [vmem:[%s6043_s0 + $0x368] sm:$0xff] }
  0xa5   :  { %907 = vmatmul.mubr.f32.gmra.mrb[62].mxu0 %v95_v32  ;;  %1307 = vmatmul.mubr.f32.gmra.mrb[62].mxu1 %v261_v34  ;;  %v141_v34 = vld [vmem:[%s6043_s0 + $0x360] sm:$0xff] }
  0xa6   :  { %3651 = vmatprep.mubr.msk.f32.mxu0 %vm308_vm0, %v98_v33  ;;  %3734 = vmatprep.mubr.msk.f32.mxu1 %vm308_vm0, %v264_v35  ;;  %v144_v35 = vld [vmem:[%s6043_s0 + $0x378] sm:$0xff] }
  0xa9   :  { %911 = vmatmul.mubr.f32.gmra.mrb[64].mxu0 %v97_v36  ;;  %1312 = vmatmul.mubr.f32.gmra.mrb[64].mxu1 %v263_v38  ;;  %v143_v38 = vld [vmem:[%s6043_s0 + $0x370] sm:$0xff] }
  0xaa   :  { %3652 = vmatprep.mubr.msk.f32.mxu0 %vm308_vm0, %v100_v37  ;;  %3735 = vmatprep.mubr.msk.f32.mxu1 %vm308_vm0, %v266_v39  ;;  %v146_v39 = vld [vmem:[%s6043_s0 + $0x388] sm:$0xff] }
  0xad   :  { %916 = vmatmul.mubr.f32.gmra.mrb[66].mxu0 %v99_v40  ;;  %1317 = vmatmul.mubr.f32.gmra.mrb[66].mxu1 %v265_v42  ;;  %v145_v42 = vld [vmem:[%s6043_s0 + $0x380] sm:$0xff] }
  0xae   :  { %3653 = vmatprep.mubr.msk.f32.mxu0 %vm308_vm0, %v102_v41  ;;  %3736 = vmatprep.mubr.msk.f32.mxu1 %vm308_vm0, %v268_v43  ;;  %v148_v43 = vld [vmem:[%s6043_s0 + $0x398] sm:$0xff] }
  0xb1   :  { %921 = vmatmul.mubr.f32.gmra.mrb[68].mxu0 %v101_v44  ;;  %1322 = vmatmul.mubr.f32.gmra.mrb[68].mxu1 %v267_v46 }
  0xb2   :  { %3654 = vmatprep.mubr.msk.f32.mxu0 %vm308_vm0, %v104_v45  ;;  %3737 = vmatprep.mubr.msk.f32.mxu1 %vm308_vm0, %v270_v47 }
  0xb5   :  { %926 = vmatmul.mubr.f32.gmra.mrb[70].mxu0 %v103_v48  ;;  %1327 = vmatmul.mubr.f32.gmra.mrb[70].mxu1 %v269_v50  ;;  %v147_v48 = vld [vmem:[%s6043_s0 + $0x390] sm:$0xff]  ;;  %v150_v50 = vld [vmem:[%s6043_s0 + $0x3a8] sm:$0xff] }
  0xb6   :  { %3655 = vmatprep.mubr.msk.f32.mxu0 %vm308_vm0, %v106_v49  ;;  %3738 = vmatprep.mubr.msk.f32.mxu1 %vm308_vm0, %v272_v51 }
  0xb9   :  { %931 = vmatmul.mubr.f32.gmra.mrb[72].mxu0 %v105_v52  ;;  %1332 = vmatmul.mubr.f32.gmra.mrb[72].mxu1 %v271_v54 }
  0xba   :  { %3656 = vmatprep.mubr.msk.f32.mxu0 %vm308_vm0, %v108_v53  ;;  %3739 = vmatprep.mubr.msk.f32.mxu1 %vm308_vm0, %v274_v55 }
  0xbd   :  { %936 = vmatmul.mubr.f32.gmra.mrb[74].mxu0 %v107_v56  ;;  %1337 = vmatmul.mubr.f32.gmra.mrb[74].mxu1 %v273_v58  ;;  %v149_v56 = vld [vmem:[%s6043_s0 + $0x3a0] sm:$0xff]  ;;  %v152_v58 = vld [vmem:[%s6043_s0 + $0x3b8] sm:$0xff] }
  0xbe   :  { %3657 = vmatprep.mubr.msk.f32.mxu0 %vm308_vm0, %v110_v57 }
  0xc1   :  { %941 = vmatmul.mubr.f32.gmra.mrb[76].mxu0 %v109_v59 }
  0xc2   :  { %3658 = vmatprep.mubr.msk.f32.mxu0 %vm308_vm0, %v112_v60 }
  0xc5   :  { %946 = vmatmul.mubr.f32.gmra.mrb[78].mxu0 %v111_v61 }
  0xc6   :  { %3659 = vmatprep.mubr.msk.f32.mxu0 %vm308_vm0, %v114_v62 }
  0xc9   :  { %951 = vmatmul.mubr.f32.gmra.mrb[80].mxu0 %v113_v63 }
  0xca   :  { %3660 = vmatprep.mubr.msk.f32.mxu0 %vm308_vm0, %v116_v0  ;;  %v151_v0 = vld [vmem:[%s6043_s0 + $0x3b0] sm:$0xff] }
  0xcd   :  { %956 = vmatmul.mubr.f32.gmra.mrb[82].mxu0 %v115_v1 }
  0xce   :  { %3661 = vmatprep.mubr.msk.f32.mxu0 %vm308_vm0, %v118_v2  ;;  %v154_v2 = vld [vmem:[%s6043_s0 + $0x3c8] sm:$0xff] }
  0xd1   :  { %961 = vmatmul.mubr.f32.gmra.mrb[84].mxu0 %v117_v4 }
  0xd2   :  { %3662 = vmatprep.mubr.msk.f32.mxu0 %vm308_vm0, %v120_v5 }
  0xd5   :  { %966 = vmatmul.mubr.f32.gmra.mrb[86].mxu0 %v119_v6 }
  0xd6   :  { %3663 = vmatprep.mubr.msk.f32.mxu0 %vm308_vm0, %v122_v7 }
  0xd9   :  { %971 = vmatmul.mubr.f32.gmra.mrb[88].mxu0 %v121_v10  ;;  %v156_v10 = vld [vmem:[%s6043_s0 + $0x3d8] sm:$0xff] }
  0xda   :  { %3664 = vmatprep.mubr.msk.f32.mxu0 %vm308_vm0, %v124_v12 }
  0xdd   :  { %976 = vmatmul.mubr.f32.gmra.mrb[90].mxu0 %v123_v13 }
  0xde   :  { %3665 = vmatprep.mubr.msk.f32.mxu0 %vm308_vm0, %v126_v14  ;;  %v155_v14 = vld [vmem:[%s6043_s0 + $0x3d0] sm:$0xff] }
  0xe1   :  { %981 = vmatmul.mubr.f32.gmra.mrb[92].mxu0 %v125_v15 }
  0xe2   :  { %3666 = vmatprep.mubr.msk.f32.mxu0 %vm308_vm0, %v128_v16  ;;  %v158_v16 = vld [vmem:[%s6043_s0 + $0x3e8] sm:$0xff] }
  0xe5   :  { %986 = vmatmul.mubr.f32.gmra.mrb[94].mxu0 %v127_v17 }
  0xe6   :  { %3667 = vmatprep.mubr.msk.f32.mxu0 %vm308_vm0, %v130_v18 }
  0xe9   :  { %991 = vmatmul.mubr.f32.gmra.mrb[96].mxu0 %v129_v19 }
  0xea   :  { %3668 = vmatprep.mubr.msk.f32.mxu0 %vm308_vm0, %v132_v20  ;;  %v157_v20 = vld [vmem:[%s6043_s0 + $0x3e0] sm:$0xff] }
  0xed   :  { %996 = vmatmul.mubr.f32.gmra.mrb[98].mxu0 %v131_v21 }
  0xee   :  { %3669 = vmatprep.mubr.msk.f32.mxu0 %vm308_vm0, %v134_v22  ;;  %v160_v22 = vld [vmem:[%s6043_s0 + $0x3f8] sm:$0xff] }
  0xf1   :  { %1001 = vmatmul.mubr.f32.gmra.mrb[100].mxu0 %v133_v23 }
  0xf2   :  { %3670 = vmatprep.mubr.msk.f32.mxu0 %vm308_vm0, %v136_v24 }
  0xf5   :  { %1006 = vmatmul.mubr.f32.gmra.mrb[102].mxu0 %v135_v25 }
  0xf6   :  { %3671 = vmatprep.mubr.msk.f32.mxu0 %vm308_vm0, %v138_v26  ;;  %v159_v26 = vld [vmem:[%s6043_s0 + $0x3f0] sm:$0xff] }
  0xf9   :  { %1011 = vmatmul.mubr.f32.gmra.mrb[104].mxu0 %v137_v27 }
  0xfa   :  { %3672 = vmatprep.mubr.msk.f32.mxu0 %vm308_vm0, %v140_v28  ;;  %v162_v28 = vld [vmem:[%s6043_s0 + $0x408] sm:$0xff] }
  0xfc   :  { %v5087_v32 = vpop.f32.mrb[0].mxu0  ;;  %v5116_v45 = vpop.f32.mrb[0].mxu1 }
  0xfd   :  { %v761_v33 = vpop.f32.mrb[1].mxu0  ;;  %1016 = vmatmul.mubr.f32.gmra.mrb[106].mxu0 %v139_v29  ;;  %v1162_v47 = vpop.f32.mrb[1].mxu1 }
  0xfe   :  { %3673 = vmatprep.mubr.msk.f32.mxu0 %vm308_vm0, %v142_v31 }
 0x100   :  { %v5096_v36 = vpop.f32.mrb[2].mxu0  ;;  %v5122_v49 = vpop.f32.mrb[2].mxu1 }
 0x101   :  { %v766_v37 = vpop.f32.mrb[3].mxu0  ;;  %1021 = vmatmul.mubr.f32.gmra.mrb[108].mxu0 %v141_v34  ;;  %v1167_v51 = vpop.f32.mrb[3].mxu1  ;;  %v161_v34 = vld [vmem:[%s6043_s0 + $0x400] sm:$0xff] }
 0x102   :  { %3674 = vmatprep.mubr.msk.f32.mxu0 %vm308_vm0, %v144_v35  ;;  %v164_v37 = vld [vmem:[%s6043_s0 + $0x418] sm:$0xff]  ;;  %v165_v51 = vld [vmem:[%s6043_s0 + $0x420] sm:$0xff] }
 0x104   :  { %v5105_v40 = vpop.f32.mrb[4].mxu0  ;;  %v5129_v53 = vpop.f32.mrb[4].mxu1 }
 0x105   :  { %v771_v41 = vpop.f32.mrb[5].mxu0  ;;  %1026 = vmatmul.mubr.f32.gmra.mrb[110].mxu0 %v143_v38  ;;  %v1172_v55 = vpop.f32.mrb[5].mxu1 }
 0x106   :  { %3675 = vmatprep.mubr.msk.f32.mxu0 %vm308_vm0, %v146_v39  ;;  %v168_v55 = vld [vmem:[%s6043_s0 + $0x438] sm:$0xff] }
 0x108   :  { %v5114_v44 = vpop.f32.mrb[6].mxu0  ;;  %v5135_v57 = vpop.f32.mrb[6].mxu1 }
 0x109   :  { %v776_v46 = vpop.f32.mrb[7].mxu0  ;;  %1031 = vmatmul.mubr.f32.gmra.mrb[112].mxu0 %v145_v42  ;;  %v1177_v59 = vpop.f32.mrb[7].mxu1  ;;  %v163_v42 = vld [vmem:[%s6043_s0 + $0x410] sm:$0xff] }
 0x10a   :  { %3676 = vmatprep.mubr.msk.f32.mxu0 %vm308_vm0, %v148_v43  ;;  %v166_v46 = vld [vmem:[%s6043_s0 + $0x428] sm:$0xff] }
 0x10c   :  { %v5127_v52 = vpop.f32.mrb[8].mxu0  ;;  %v5142_v61 = vpop.f32.mrb[8].mxu1 }
 0x10d   :  { %v781_v54 = vpop.f32.mrb[9].mxu0  ;;  %1036 = vmatmul.mubr.f32.gmra.mrb[114].mxu0 %v147_v48  ;;  %v1182_v63 = vpop.f32.mrb[9].mxu1 }
 0x10e   :  { %3677 = vmatprep.mubr.msk.f32.mxu0 %vm308_vm0, %v150_v50 }
 0x110   :  { %v5140_v60 = vpop.f32.mrb[10].mxu0  ;;  %v5148_v1 = vpop.f32.mrb[10].mxu1 }
 0x111   :  { %v786_v62 = vpop.f32.mrb[11].mxu0  ;;  %1040 = vmatmul.mubr.f32.gmra.mrb[116].mxu0 %v149_v56  ;;  %v1187_v4 = vpop.f32.mrb[11].mxu1 }
 0x112   :  { %3678 = vmatprep.mubr.msk.f32.mxu0 %vm308_vm0, %v152_v58  ;;  %v167_v62 = vld [vmem:[%s6043_s0 + $0x430] sm:$0xff] }
 0x114   :  { %v5153_v5 = vpop.f32.mrb[12].mxu0  ;;  %v1190_v7 = vpop.f32.mrb[12].mxu1 }
 0x115   :  { %v791_v6 = vpop.f32.mrb[13].mxu0  ;;  %1044 = vmatmul.mubr.f32.gmra.mrb[118].mxu0 %v151_v0  ;;  %v1191_v9 = vpop.f32.mrb[13].mxu1  ;;  %v170_v0 = vld [vmem:[%s6043_s0 + $0x448] sm:$0xff]  ;;  %v169_v7 = vld [vmem:[%s6043_s0 + $0x440] sm:$0xff] }
 0x116   :  { %3679 = vmatprep.mubr.msk.f32.mxu0 %vm308_vm0, %v154_v2  ;;  %v172_v9 = vld [vmem:[%s6043_s0 + $0x458] sm:$0xff] }
 0x118   :  { %v5162_v11 = vpop.f32.mrb[14].mxu0  ;;  %v1194_v13 = vpop.f32.mrb[14].mxu1 }
 0x119   :  { %v796_v12 = vpop.f32.mrb[15].mxu0  ;;  %1048 = vmatmul.mubr.f32.gmra.mrb[120].mxu0 %v153_v8  ;;  %v1195_v15 = vpop.f32.mrb[15].mxu1 }
 0x11a   :  { %3680 = vmatprep.mubr.msk.f32.mxu0 %vm308_vm0, %v156_v10 }
 0x11c   :  { %v5171_v17 = vpop.f32.mrb[16].mxu0  ;;  %v1198_v19 = vpop.f32.mrb[16].mxu1 }
 0x11d   :  { %v801_v18 = vpop.f32.mrb[17].mxu0  ;;  %1052 = vmatmul.mubr.f32.gmra.mrb[122].mxu0 %v155_v14  ;;  %v1199_v21 = vpop.f32.mrb[17].mxu1  ;;  %v171_v14 = vld [vmem:[%s6043_s0 + $0x450] sm:$0xff] }
 0x11e   :  { %3681 = vmatprep.mubr.msk.f32.mxu0 %vm308_vm0, %v158_v16  ;;  %v174_v16 = vld [vmem:[%s6043_s0 + $0x468] sm:$0xff]  ;;  %v173_v21 = vld [vmem:[%s6043_s0 + $0x460] sm:$0xff] }
 0x120   :  { %v5180_v23 = vpop.f32.mrb[18].mxu0  ;;  %v1202_v25 = vpop.f32.mrb[18].mxu1 }
 0x121   :  { %v806_v24 = vpop.f32.mrb[19].mxu0  ;;  %1056 = vmatmul.mubr.f32.gmra.mrb[124].mxu0 %v157_v20  ;;  %v1203_v27 = vpop.f32.mrb[19].mxu1 }
 0x122   :  { %3682 = vmatprep.mubr.msk.f32.mxu0 %vm308_vm0, %v160_v22  ;;  %v176_v24 = vld [vmem:[%s6043_s0 + $0x478] sm:$0xff] }
 0x124   :  { %v5189_v29 = vpop.f32.mrb[20].mxu0  ;;  %v1206_v33 = vpop.f32.mrb[20].mxu1 }
 0x125   :  { %v811_v31 = vpop.f32.mrb[21].mxu0  ;;  %1060 = vmatmul.mubr.f32.gmra.mrb[126].mxu0 %v159_v26  ;;  %v1207_v35 = vpop.f32.mrb[21].mxu1  ;;  %v178_v33 = vld [vmem:[%s6043_s0 + $0x488] sm:$0xff] }
 0x126   :  { %3683 = vmatprep.mubr.msk.f32.mxu0 %vm308_vm0, %v162_v28  ;;  %v175_v28 = vld [vmem:[%s6043_s0 + $0x470] sm:$0xff] }
 0x128   :  { %v5198_v38 = vpop.f32.mrb[22].mxu0  ;;  %v1210_v41 = vpop.f32.mrb[22].mxu1 }
 0x129   :  { %v816_v39 = vpop.f32.mrb[23].mxu0  ;;  %1064 = vmatmul.mubr.f32.gmra.mrb[128].mxu0 %v161_v34  ;;  %v1211_v43 = vpop.f32.mrb[23].mxu1 }
 0x12a   :  { %3684 = vmatprep.mubr.msk.f32.mxu0 %vm308_vm0, %v164_v37  ;;  %v177_v39 = vld [vmem:[%s6043_s0 + $0x480] sm:$0xff] }
 0x12c   :  { %v5207_v47 = vpop.f32.mrb[24].mxu0  ;;  %v1214_v50 = vpop.f32.mrb[24].mxu1 }
 0x12d   :  { %v821_v48 = vpop.f32.mrb[25].mxu0  ;;  %1069 = vmatmul.mubr.f32.gmra.mrb[130].mxu0 %v163_v42  ;;  %v1215_v54 = vpop.f32.mrb[25].mxu1  ;;  %v180_v42 = vld [vmem:[%s6043_s0 + $0x498] sm:$0xff]  ;;  %v179_v50 = vld [vmem:[%s6043_s0 + $0x490] sm:$0xff] }
 0x12e   :  { %3685 = vmatprep.mubr.msk.f32.mxu0 %vm308_vm0, %v166_v46  ;;  %v182_v54 = vld [vmem:[%s6043_s0 + $0x4a8] sm:$0xff] }
 0x130   :  { %v5216_v56 = vpop.f32.mrb[26].mxu0  ;;  %v5218_v59 = vpop.f32.mrb[26].mxu1 }
 0x131   :  { %v826_v58 = vpop.f32.mrb[27].mxu0  ;;  %1074 = vmatmul.mubr.f32.gmra.mrb[132].mxu0 %v165_v51  ;;  %v1220_v63 = vpop.f32.mrb[27].mxu1 }
 0x132   :  { %3686 = vmatprep.mubr.msk.f32.mxu0 %vm308_vm0, %v168_v55  ;;  %v181_v63 = vld [vmem:[%s6043_s0 + $0x4a0] sm:$0xff] }
 0x134   :  { %v5227_v2 = vpop.f32.mrb[28].mxu0  ;;  %v5229_v6 = vpop.f32.mrb[28].mxu1 }
 0x135   :  { %v831_v4 = vpop.f32.mrb[29].mxu0  ;;  %1079 = vmatmul.mubr.f32.gmra.mrb[134].mxu0 %v167_v62  ;;  %v1225_v8 = vpop.f32.mrb[29].mxu1 }
 0x136   :  { %3687 = vmatprep.mubr.msk.f32.mxu0 %vm308_vm0, %v170_v0  ;;  %v184_v4 = vld [vmem:[%s6043_s0 + $0x4b8] sm:$0xff] }
 0x138   :  { %v5238_v10 = vpop.f32.mrb[30].mxu0  ;;  %v5240_v13 = vpop.f32.mrb[30].mxu1 }
 0x139   :  { %v836_v12 = vpop.f32.mrb[31].mxu0  ;;  %1084 = vmatmul.mubr.f32.gmra.mrb[136].mxu0 %v169_v7  ;;  %v1230_v15 = vpop.f32.mrb[31].mxu1 }
 0x13a   :  { %3688 = vmatprep.mubr.msk.f32.mxu0 %vm308_vm0, %v172_v9  ;;  %v183_v12 = vld [vmem:[%s6043_s0 + $0x4b0] sm:$0xff]  ;;  %v186_v15 = vld [vmem:[%s6043_s0 + $0x4c8] sm:$0xff] }
 0x13c   :  { %v5249_v18 = vpop.f32.mrb[32].mxu0  ;;  %v5251_v20 = vpop.f32.mrb[32].mxu1 }
 0x13d   :  { %6070 = vst [vmem:[#allocation5_spill] sm:$0xff] %v5249_v18  ;;  %v841_v19 = vpop.f32.mrb[33].mxu0  ;;  %1089 = vmatmul.mubr.f32.gmra.mrb[138].mxu0 %v171_v14  ;;  %v1235_v22 = vpop.f32.mrb[33].mxu1 }
 0x13e   :  { %3689 = vmatprep.mubr.msk.f32.mxu0 %vm308_vm0, %v174_v16  ;;  %v185_v22 = vld [vmem:[%s6043_s0 + $0x4c0] sm:$0xff] }
 0x140   :  { %v5260_v25 = vpop.f32.mrb[34].mxu0  ;;  %v5262_v27 = vpop.f32.mrb[34].mxu1 }
 0x141   :  { %v846_v26 = vpop.f32.mrb[35].mxu0  ;;  %1094 = vmatmul.mubr.f32.gmra.mrb[140].mxu0 %v173_v21  ;;  %v1240_v31 = vpop.f32.mrb[35].mxu1 }
 0x142   :  { %3690 = vmatprep.mubr.msk.f32.mxu0 %vm308_vm0, %v176_v24  ;;  %v188_v26 = vld [vmem:[%s6043_s0 + $0x4d8] sm:$0xff] }
 0x144   :  { %v5271_v34 = vpop.f32.mrb[36].mxu0  ;;  %v5273_v37 = vpop.f32.mrb[36].mxu1 }
 0x145   :  { %v851_v35 = vpop.f32.mrb[37].mxu0  ;;  %1099 = vmatmul.mubr.f32.gmra.mrb[142].mxu0 %v175_v28  ;;  %v1245_v41 = vpop.f32.mrb[37].mxu1 }
 0x146   :  { %3691 = vmatprep.mubr.msk.f32.mxu0 %vm308_vm0, %v178_v33  ;;  %v187_v35 = vld [vmem:[%s6043_s0 + $0x4d0] sm:$0xff]  ;;  %v190_v41 = vld [vmem:[%s6043_s0 + $0x4e8] sm:$0xff] }
 0x148   :  { %v5282_v43 = vpop.f32.mrb[38].mxu0  ;;  %v5284_v48 = vpop.f32.mrb[38].mxu1 }
 0x149   :  { %v856_v46 = vpop.f32.mrb[39].mxu0  ;;  %1104 = vmatmul.mubr.f32.gmra.mrb[144].mxu0 %v177_v39  ;;  %v1250_v51 = vpop.f32.mrb[39].mxu1 }
 0x14a   :  { %3692 = vmatprep.mubr.msk.f32.mxu0 %vm308_vm0, %v180_v42  ;;  %v189_v51 = vld [vmem:[%s6043_s0 + $0x4e0] sm:$0xff] }
 0x14c   :  { %v5293_v55 = vpop.f32.mrb[40].mxu0  ;;  %v5295_v62 = vpop.f32.mrb[40].mxu1 }
 0x14d   :  { %v861_v58 = vpop.f32.mrb[41].mxu0  ;;  %1109 = vmatmul.mubr.f32.gmra.mrb[146].mxu0 %v179_v50  ;;  %v1255_v0 = vpop.f32.mrb[41].mxu1 }
 0x14e   :  { %3693 = vmatprep.mubr.msk.f32.mxu0 %vm308_vm0, %v182_v54  ;;  %v192_v58 = vld [vmem:[%s6043_s0 + $0x4f8] sm:$0xff] }
 0x150   :  { %v5304_v7 = vpop.f32.mrb[42].mxu0  ;;  %v5306_v9 = vpop.f32.mrb[42].mxu1 }
 0x151   :  { %v866_v8 = vpop.f32.mrb[43].mxu0  ;;  %1114 = vmatmul.mubr.f32.gmra.mrb[148].mxu0 %v181_v63  ;;  %6071 = vst [vmem:[#allocation6_spill] sm:$0xff] %v5306_v9  ;;  %v1260_v14 = vpop.f32.mrb[43].mxu1 }
 0x152   :  { %3694 = vmatprep.mubr.msk.f32.mxu0 %vm308_vm0, %v184_v4  ;;  %v191_v8 = vld [vmem:[%s6043_s0 + $0x4f0] sm:$0xff]  ;;  %v194_v14 = vld [vmem:[%s6043_s0 + $0x508] sm:$0xff] }
 0x154   :  { %v5315_v16 = vpop.f32.mrb[44].mxu0  ;;  %v5317_v21 = vpop.f32.mrb[44].mxu1 }
 0x155   :  { %v871_v19 = vpop.f32.mrb[45].mxu0  ;;  %1119 = vmatmul.mubr.f32.gmra.mrb[150].mxu0 %v183_v12  ;;  %6072 = vst [vmem:[#allocation7_spill] sm:$0xff] %v5317_v21  ;;  %v1265_v24 = vpop.f32.mrb[45].mxu1 }
 0x156   :  { %3695 = vmatprep.mubr.msk.f32.mxu0 %vm308_vm0, %v186_v15  ;;  %v193_v24 = vld [vmem:[%s6043_s0 + $0x500] sm:$0xff] }
 0x158   :  { %v5326_v28 = vpop.f32.mrb[46].mxu0  ;;  %v5328_v33 = vpop.f32.mrb[46].mxu1 }
 0x159   :  { %v876_v31 = vpop.f32.mrb[47].mxu0  ;;  %1124 = vmatmul.mubr.f32.gmra.mrb[152].mxu0 %v185_v22  ;;  %6073 = vst [vmem:[#allocation8_spill] sm:$0xff] %v5328_v33  ;;  %v1270_v39 = vpop.f32.mrb[47].mxu1 }
 0x15a   :  { %3696 = vmatprep.mubr.msk.f32.mxu0 %vm308_vm0, %v188_v26  ;;  %v196_v31 = vld [vmem:[%s6043_s0 + $0x518] sm:$0xff] }
 0x15c   :  { %v5337_v42 = vpop.f32.mrb[48].mxu0  ;;  %v5339_v50 = vpop.f32.mrb[48].mxu1 }
 0x15d   :  { %v881_v46 = vpop.f32.mrb[49].mxu0  ;;  %1129 = vmatmul.mubr.f32.gmra.mrb[154].mxu0 %v187_v35  ;;  %6074 = vst [vmem:[#allocation9_spill] sm:$0xff] %v5339_v50  ;;  %v1275_v54 = vpop.f32.mrb[49].mxu1 }
 0x15e   :  { %3697 = vmatprep.mubr.msk.f32.mxu0 %vm308_vm0, %v190_v41  ;;  %v276_v46 = vld [vmem:[%s6043_s0 + $0x798] sm:$0xff] }
 0x15f   :  { %3740 = vmatprep.mubr.msk.f32.mxu1 %vm308_vm0, %v276_v46 }
 0x160   :  { %v884_v63 = vpop.f32.mrb[50].mxu0  ;;  %v5348_v4 = vpop.f32.mrb[50].mxu1 }
 0x161   :  { %v885_v0 = vpop.f32.mrb[51].mxu0  ;;  %1134 = vmatmul.mubr.f32.gmra.mrb[156].mxu0 %v189_v51  ;;  %6075 = vst [vmem:[#allocation10_spill] sm:$0xff] %v5348_v4  ;;  %v1280_v12 = vpop.f32.mrb[51].mxu1  ;;  %v195_v51 = vld [vmem:[%s6043_s0 + $0x510] sm:$0xff] }
 0x162   :  { %3698 = vmatprep.mubr.msk.f32.mxu0 %vm308_vm0, %v192_v58  ;;  %v198_v58 = vld [vmem:[%s6043_s0 + $0x528] sm:$0xff]  ;;  %v275_v63 = vld [vmem:[%s6043_s0 + $0x790] sm:$0xff] }
 0x163   :  { %1342 = vmatmul.mubr.f32.gmra.mrb[76].mxu1 %v275_v63 }
 0x164   :  { %v888_v15 = vpop.f32.mrb[52].mxu0  ;;  %v5357_v22 = vpop.f32.mrb[52].mxu1 }
 0x165   :  { %v889_v19 = vpop.f32.mrb[53].mxu0  ;;  %1139 = vmatmul.mubr.f32.gmra.mrb[158].mxu0 %v191_v8  ;;  %6076 = vst [vmem:[#allocation11_spill] sm:$0xff] %v5357_v22  ;;  %v1285_v26 = vpop.f32.mrb[53].mxu1  ;;  %v197_v15 = vld [vmem:[%s6043_s0 + $0x520] sm:$0xff] }
 0x166   :  { %3699 = vmatprep.mubr.msk.f32.mxu0 %vm308_vm0, %v194_v14  ;;  %v278_v14 = vld [vmem:[%s6043_s0 + $0x7a8] sm:$0xff] }
 0x167   :  { %3741 = vmatprep.mubr.msk.f32.mxu1 %vm308_vm0, %v278_v14  ;;  %v281_v14 = vld [vmem:[%s6043_s0 + $0x7c0] sm:$0xff] }
 0x168   :  { %v892_v35 = vpop.f32.mrb[54].mxu0  ;;  %v5366_v41 = vpop.f32.mrb[54].mxu1 }
 0x169   :  { %v893_v39 = vpop.f32.mrb[55].mxu0  ;;  %1144 = vmatmul.mubr.f32.gmra.mrb[160].mxu0 %v193_v24  ;;  %6077 = vst [vmem:[#allocation12_spill] sm:$0xff] %v5366_v41  ;;  %v1290_v54 = vpop.f32.mrb[55].mxu1  ;;  %v277_v24 = vld [vmem:[%s6043_s0 + $0x7a0] sm:$0xff] }
 0x16a   :  { %3700 = vmatprep.mubr.msk.f32.mxu0 %vm308_vm0, %v196_v31  ;;  %1346 = vmatmul.mubr.f32.gmra.mrb[78].mxu1 %v277_v24  ;;  %v280_v39 = vld [vmem:[%s6043_s0 + $0x7b8] sm:$0xff] }
 0x16b   :  { %3742 = vmatprep.mubr.msk.f32.mxu1 %vm308_vm0, %v280_v39  ;;  %v283_v39 = vld [vmem:[%s6043_s0 + $0x7d0] sm:$0xff] }
 0x16c   :  { %v896_v0 = vpop.f32.mrb[56].mxu0  ;;  %v5382_v12 = vpop.f32.mrb[56].mxu1 }
 0x16d   :  { %v897_v8 = vpop.f32.mrb[57].mxu0  ;;  %1149 = vmatmul.mubr.f32.gmra.mrb[162].mxu0 %v195_v51  ;;  %6078 = vst [vmem:[#allocation13_spill] sm:$0xff] %v5382_v12  ;;  %v1295_v19 = vpop.f32.mrb[57].mxu1  ;;  %v279_v51 = vld [vmem:[%s6043_s0 + $0x7b0] sm:$0xff]  ;;  %v282_v0 = vld [vmem:[%s6043_s0 + $0x7c8] sm:$0xff] }
 0x16e   :  { %3701 = vmatprep.mubr.msk.f32.mxu0 %vm308_vm0, %v198_v58  ;;  %1350 = vmatmul.mubr.f32.gmra.mrb[80].mxu1 %v279_v51 }
 0x16f   :  { %3743 = vmatprep.mubr.msk.f32.mxu1 %vm308_vm0, %v282_v0 }
 0x170   :  { %v900_v26 = vpop.f32.mrb[58].mxu0  ;;  %v5395_v35 = vpop.f32.mrb[58].mxu1 }
 0x171   :  { %v901_v31 = vpop.f32.mrb[59].mxu0  ;;  %1154 = vmatmul.mubr.f32.gmra.mrb[164].mxu0 %v197_v15  ;;  %6079 = vst [vmem:[#allocation14_spill] sm:$0xff] %v5395_v35  ;;  %v1300_v46 = vpop.f32.mrb[59].mxu1  ;;  %v284_v26 = vld [vmem:[%s6043_s0 + $0x7d8] sm:$0xff] }
 0x172   :  { %1354 = vmatmul.mubr.f32.gmra.mrb[82].mxu1 %v281_v14  ;;  %v286_v14 = vld [vmem:[%s6043_s0 + $0x7e8] sm:$0xff] }
 0x173   :  { %3744 = vmatprep.mubr.msk.f32.mxu1 %vm308_vm0, %v284_v26 }
 0x174   :  { %v904_v54 = vpop.f32.mrb[60].mxu0  ;;  %v5404_v63 = vpop.f32.mrb[60].mxu1 }
 0x175   :  { %v905_v58 = vpop.f32.mrb[61].mxu0  ;;  %6080 = vst [vmem:[#allocation15_spill] sm:$0xff] %v5404_v63  ;;  %v1305_v8 = vpop.f32.mrb[61].mxu1 }
 0x176   :  { %1358 = vmatmul.mubr.f32.gmra.mrb[84].mxu1 %v283_v39 }
 0x177   :  { %3745 = vmatprep.mubr.msk.f32.mxu1 %vm308_vm0, %v286_v14  ;;  %v288_v14 = vld [vmem:[%s6043_s0 + $0x7f8] sm:$0xff] }
 0x178   :  { %v908_v15 = vpop.f32.mrb[62].mxu0  ;;  %v5413_v24 = vpop.f32.mrb[62].mxu1 }
 0x179   :  { %v909_v19 = vpop.f32.mrb[63].mxu0  ;;  %6081 = vst [vmem:[#allocation16_spill] sm:$0xff] %v5413_v24  ;;  %v1310_v31 = vpop.f32.mrb[63].mxu1  ;;  %v285_v15 = vld [vmem:[%s6043_s0 + $0x7e0] sm:$0xff] }
 0x17a   :  { %1362 = vmatmul.mubr.f32.gmra.mrb[86].mxu1 %v285_v15  ;;  %v287_v15 = vld [vmem:[%s6043_s0 + $0x7f0] sm:$0xff] }
 0x17b   :  { %3746 = vmatprep.mubr.msk.f32.mxu1 %vm308_vm0, %v288_v14 }
 0x17c   :  { %v5422_v46 = vpop.f32.mrb[64].mxu0  ;;  %v5426_v58 = vpop.f32.mrb[64].mxu1 }
 0x17d   :  { %v914_v54 = vpop.f32.mrb[65].mxu0  ;;  %v1315_v8 = vpop.f32.mrb[65].mxu1 }
 0x17e   :  { %1366 = vmatmul.mubr.f32.gmra.mrb[88].mxu1 %v287_v15 }
 0x17f   :  { %3886 = vmatprep.mubr.msk.f32.mxu1 %vm4303_vm1, %v6055_v30 }
 0x180   :  { %v5437_v19 = vpop.f32.mrb[66].mxu0  ;;  %v5441_v39 = vpop.f32.mrb[66].mxu1 }
 0x181   :  { %v919_v31 = vpop.f32.mrb[67].mxu0  ;;  %v1320_v8 = vpop.f32.mrb[67].mxu1 }
 0x184   :  { %v5452_v3 = vpop.f32.mrb[68].mxu0  ;;  %v5456_v51 = vpop.f32.mrb[68].mxu1 }
 0x185   :  { %v924_v26 = vpop.f32.mrb[69].mxu0  ;;  %v1325_v54 = vpop.f32.mrb[69].mxu1 }
 0x188   :  { %v5460_v0 = vpop.f32.mrb[70].mxu0  ;;  %v5466_v24 = vpop.f32.mrb[70].mxu1 }
 0x189   :  { %v929_v15 = vpop.f32.mrb[71].mxu0  ;;  %v1330_v31 = vpop.f32.mrb[71].mxu1 }
 0x18c   :  { %v5470_v63 = vpop.f32.mrb[72].mxu0  ;;  %v5474_v35 = vpop.f32.mrb[72].mxu1 }
 0x18d   :  { %v934_v8 = vpop.f32.mrb[73].mxu0  ;;  %v1335_v12 = vpop.f32.mrb[73].mxu1 }
 0x190   :  { %v5478_v14 = vpop.f32.mrb[74].mxu0  ;;  %v5482_v26 = vpop.f32.mrb[74].mxu1 }
 0x191   :  { %v939_v41 = vpop.f32.mrb[75].mxu0  ;;  %v1340_v22 = vpop.f32.mrb[75].mxu1 }
 0x194   :  { %v5486_v54 = vpop.f32.mrb[76].mxu0 }
 0x195   :  { %v944_v4 = vpop.f32.mrb[77].mxu0 }
 0x198   :  { %v5490_v30 = vpop.f32.mrb[78].mxu0 }
 0x199   :  { %6082 = vst [vmem:[#allocation17_spill] sm:$0xff] %v5490_v30  ;;  %v949_v50 = vpop.f32.mrb[79].mxu0 }
 0x19c   :  { %v5494_v15 = vpop.f32.mrb[80].mxu0 }
 0x19d   :  { %6083 = vst [vmem:[#allocation18_spill] sm:$0xff] %v5494_v15  ;;  %v954_v33 = vpop.f32.mrb[81].mxu0 }
 0x1a0   :  { %v5498_v31 = vpop.f32.mrb[82].mxu0 }
 0x1a1   :  { %6084 = vst [vmem:[#allocation19_spill] sm:$0xff] %v5498_v31  ;;  %v959_v21 = vpop.f32.mrb[83].mxu0 }
 0x1a4   :  { %v5502_v8 = vpop.f32.mrb[84].mxu0 }
 0x1a5   :  { %6085 = vst [vmem:[#allocation20_spill] sm:$0xff] %v5502_v8  ;;  %v964_v9 = vpop.f32.mrb[85].mxu0 }
 0x1a8   :  { %v5506_v12 = vpop.f32.mrb[86].mxu0 }
 0x1a9   :  { %6086 = vst [vmem:[#allocation21_spill] sm:$0xff] %v5506_v12  ;;  %v969_v30 = vpop.f32.mrb[87].mxu0 }
 0x1ac   :  { %v5510_v41 = vpop.f32.mrb[88].mxu0 }
 0x1ad   :  { %6087 = vst [vmem:[#allocation22_spill] sm:$0xff] %v5510_v41  ;;  %v974_v15 = vpop.f32.mrb[89].mxu0 }
 0x1ae   :  { %v6094_v15 = vmax.f32 %v5116_v45, %v5426_v58 }
 0x1b0   :  { %v5514_v22 = vpop.f32.mrb[90].mxu0 }
 0x1b1   :  { %6088 = vst [vmem:[#allocation23_spill] sm:$0xff] %v5514_v22  ;;  %v979_v31 = vpop.f32.mrb[91].mxu0 }
 0x1b4   :  { %v5518_v4 = vpop.f32.mrb[92].mxu0 }
 0x1b5   :  { %6089 = vst [vmem:[#allocation24_spill] sm:$0xff] %v5518_v4  ;;  %v984_v8 = vpop.f32.mrb[93].mxu0 }
 0x1b8   :  { %v5522_v50 = vpop.f32.mrb[94].mxu0 }
 0x1b9   :  { %6090 = vst [vmem:[#allocation25_spill] sm:$0xff] %v5522_v50  ;;  %v989_v12 = vpop.f32.mrb[95].mxu0 }
 0x1bc   :  { %v5526_v33 = vpop.f32.mrb[96].mxu0 }
 0x1bd   :  { %6091 = vst [vmem:[#allocation26_spill] sm:$0xff] %v5526_v33  ;;  %v994_v41 = vpop.f32.mrb[97].mxu0 }
 0x1c0   :  { %v5530_v21 = vpop.f32.mrb[98].mxu0 }
 0x1c1   :  { %6092 = vst [vmem:[#allocation27_spill] sm:$0xff] %v5530_v21  ;;  %v999_v22 = vpop.f32.mrb[99].mxu0 }
 0x1c2   :  { %v6095_v22 = vmax.f32 %v5122_v49, %v5441_v39 }
 0x1c4   :  { %v5534_v9 = vpop.f32.mrb[100].mxu0 }
 0x1c5   :  { %6093 = vst [vmem:[#allocation28_spill] sm:$0xff] %v5534_v9  ;;  %v1004_v4 = vpop.f32.mrb[101].mxu0 }
 0x1c8   :  { %v1007_v30 = vpop.f32.mrb[102].mxu0 }
 0x1c9   :  { %v1389_v12 = vmax.f32 %v5282_v43, %v1007_v30  ;;  %v1009_v50 = vpop.f32.mrb[103].mxu0  ;;  %v6096_v43 = vmax.f32 %v5129_v53, %v5456_v51 }
 0x1cb   :  { %v5542_v41 = vmax.f32 %v1389_v12, %v6094_v15 }
 0x1cc   :  { %v1012_v33 = vpop.f32.mrb[104].mxu0 }
 0x1cd   :  { %v1390_v18 = vmax.f32 %v5293_v55, %v1012_v33  ;;  %v1014_v31 = vpop.f32.mrb[105].mxu0  ;;  %v6097_v55 = vmax.f32 %v5135_v57, %v5466_v24 }
 0x1cf   :  { %v5548_v21 = vmax.f32 %v1390_v18, %v6095_v22 }
 0x1d0   :  { %v1017_v8 = vpop.f32.mrb[106].mxu0 }
 0x1d1   :  { %v1391_v4 = vmax.f32 %v5304_v7, %v1017_v8  ;;  %v1019_v9 = vpop.f32.mrb[107].mxu0  ;;  %v6098_v7 = vmax.f32 %v5142_v61, %v5474_v35 }
 0x1d3   :  { %v5554_v50 = vmax.f32 %v1391_v4, %v6096_v43 }
 0x1d4   :  { %v1022_v45 = vpop.f32.mrb[108].mxu0 }
 0x1d5   :  { %v1392_v58 = vmax.f32 %v5315_v16, %v1022_v45  ;;  %v1024_v30 = vpop.f32.mrb[109].mxu0  ;;  %v6099_v16 = vmax.f32 %v5148_v1, %v5482_v26  ;;  %v6100_v26 = vmax.f32 %v5087_v32, %v5422_v46  ;;  %v5591_v32 = vld [vmem:[%s6045_s2] ss:$0 sm:$0xff] }
 0x1d7   :  { %v5560_v33 = vmax.f32 %v1392_v58, %v6097_v55 }
 0x1d8   :  { %v1027_v49 = vpop.f32.mrb[110].mxu0 }
 0x1d9   :  { %v1393_v18 = vmax.f32 %v5326_v28, %v1027_v49  ;;  %v1029_v39 = vpop.f32.mrb[111].mxu0 }
 0x1db   :  { %v5566_v9 = vmax.f32 %v1393_v18, %v6098_v7 }
 0x1dc   :  { %v1032_v53 = vpop.f32.mrb[112].mxu0 }
 0x1dd   :  { %v1394_v51 = vmax.f32 %v5337_v42, %v1032_v53  ;;  %v1034_v15 = vpop.f32.mrb[113].mxu0 }
 0x1df   :  { %v5572_v31 = vmax.f32 %v1394_v51, %v6099_v16  ;;  %v6101_v51 = vmax.f32 %v5096_v36, %v5437_v19  ;;  %v1502_v16 = vld [vmem:[%s6046_s3] sm:$0xff] }
 0x1e0   :  { %v1037_v57 = vpop.f32.mrb[114].mxu0 }
 0x1e1   :  { %v1038_v24 = vpop.f32.mrb[115].mxu0 }
 0x1e4   :  { %v1041_v8 = vpop.f32.mrb[116].mxu0 }
 0x1e5   :  { %v1042_v12 = vpop.f32.mrb[117].mxu0 }
 0x1e6   :  { %v6102_v12 = vmax.f32 %v5105_v40, %v5452_v3 }
 0x1e8   :  { %v1045_v28 = vpop.f32.mrb[118].mxu0 }
 0x1e9   :  { %v1046_v22 = vpop.f32.mrb[119].mxu0 }
 0x1ea   :  { %v1506_v22 = vld [vmem:[%s6046_s3 + $0x20] sm:$0xff] }
 0x1ec   :  { %v1049_v4 = vpop.f32.mrb[120].mxu0 }
 0x1ed   :  { %v1050_v43 = vpop.f32.mrb[121].mxu0  ;;  %v1507_v4 = vld [vmem:[%s6046_s3 + $0x28] sm:$0xff] }
 0x1ee   :  { %v4149_v3 = vpack.c.bf16 %v1507_v4, %v1506_v22  ;;  %v1515_v22 = vld [vmem:[%s6046_s3 + $0x68] sm:$0xff] }
 0x1f0   :  { %v1053_v61 = vpop.f32.mrb[122].mxu0 }
 0x1f1   :  { %v1054_v35 = vpop.f32.mrb[123].mxu0 }
 0x1f2   :  { %v6103_v35 = vmov 0.0  }
 0x1f4   :  { %v1057_v45 = vpop.f32.mrb[124].mxu0 }
 0x1f5   :  { %v1058_v58 = vpop.f32.mrb[125].mxu0 }
 0x1f6   :  { %v6104_v58 = vmax.f32 %v5114_v44, %v5460_v0 }
 0x1f8   :  { %v1061_v30 = vpop.f32.mrb[126].mxu0 }
 0x1f9   :  { %v1062_v42 = vpop.f32.mrb[127].mxu0 }
 0x1fa   :  { %v6105_v42 = vmov 0.0|0.0  }
 0x1fc   :  { %v1065_v55 = vpop.f32.mrb[128].mxu0 }
 0x1fd   :  { %v1395_v49 = vmax.f32 %v1065_v55, %v5218_v59  ;;  %v1067_v1 = vpop.f32.mrb[129].mxu0  ;;  %v1503_v59 = vld [vmem:[%s6046_s3 + $0x8] sm:$0xff]  ;;  %v1509_v55 = vld [vmem:[%s6046_s3 + $0x38] sm:$0xff] }
 0x1fe   :  { %v4146_v19 = vpack.c.bf16 %v1503_v59, %v1502_v16 }
 0x1ff   :  { %v1420_v18 = vmax.f32 %v6100_v26, %v1395_v49 }
 0x200   :  { %v1070_v39 = vpop.f32.mrb[130].mxu0 }
 0x201   :  { %v1396_v7 = vmax.f32 %v1070_v39, %v5229_v6  ;;  %v1072_v53 = vpop.f32.mrb[131].mxu0  ;;  %v1452_v24 = vadd.f32 %v5591_v32, %v1420_v18  ;;  %v6106_v39 = vmax.f32 %v5127_v52, %v5470_v63 }
 0x202   :  { %v1511_v53 = vld [vmem:[%s6046_s3 + $0x48] sm:$0xff] }
 0x203   :  { %v1421_v15 = vmax.f32 %v6101_v51, %v1396_v7  ;;  %v1477_v40 = vmax.f32 %v1452_v24, 0.0 }
 0x204   :  { %v1075_v46 = vpop.f32.mrb[132].mxu0 }
 0x205   :  { %v1453_v6 = vadd.f32 %v5591_v32, %v1421_v15  ;;  %v1397_v57 = vmax.f32 %v1075_v46, %v5240_v13  ;;  %v1077_v36 = vpop.f32.mrb[133].mxu0  ;;  %v6107_v46 = vmax.f32 %v5140_v60, %v5478_v14 }
 0x207   :  { %v1478_v8 = vmax.f32 %v1453_v6, 0.0  ;;  %v1422_v28 = vmax.f32 %v6102_v12, %v1397_v57  ;;  %v1513_v57 = vld [vmem:[%s6046_s3 + $0x58] sm:$0xff]  ;;  %v6108_v12 = vmax.f32 %v5153_v5, %v5486_v54 }
 0x208   :  { %v1080_v43 = vpop.f32.mrb[134].mxu0 }
 0x209   :  { %v1398_v13 = vmax.f32 %v1080_v43, %v5251_v20  ;;  %3887 = vmatmul.mubr.msk.f32.vlgmr.msra.gmra.mrb[90].mxu1 %vm1552_vm2, %v1478_v8  ;;  %v1082_v61 = vpop.f32.mrb[135].mxu0  ;;  %v1454_v45 = vadd.f32 %v5591_v32, %v1422_v28  ;;  %v1508_v20 = vld [vmem:[%s6046_s3 + $0x30] sm:$0xff] }
 0x20a   :  { %4147 = vmatpush3.bf16.msra.mxu1 %v4146_v19  ;;  %3893 = vmatprep.mubr.msk.f32.mxu1 %vm4303_vm1, %v6103_v35  ;;  %v4152_v44 = vpack.c.bf16 %v1509_v55, %v1508_v20  ;;  %v6111_v20 = vld [vmem:[#allocation6_spill] sm:$0xff] }
 0x20b   :  { %v1423_v30 = vmax.f32 %v6104_v58, %v1398_v13  ;;  %4148 = vmatprep.subr.bf16.mxu1 %v6105_v42  ;;  %v1479_v0 = vmax.f32 %v1454_v45, 0.0  ;;  %v1517_v58 = vld [vmem:[%s6046_s3 + $0x78] sm:$0xff] }
 0x20c   :  { %v1085_v49 = vpop.f32.mrb[136].mxu0 }
 0x20d   :  { %v1399_v1 = vmax.f32 %v1085_v49, %v5262_v27  ;;  %3894 = vmatmul.mubr.msk.f32.vlgmr.msra.gmra.mrb[92].mxu1 %vm1552_vm2, %v1477_v40  ;;  %v1087_v26 = vpop.f32.mrb[137].mxu0  ;;  %v1455_v18 = vadd.f32 %v5591_v32, %v1423_v30  ;;  %v1510_v27 = vld [vmem:[%s6046_s3 + $0x40] sm:$0xff] }
 0x20e   :  { %4150 = vmatpush3.bf16.msra.mxu1 %v4149_v3  ;;  %3900 = vmatprep.mubr.msk.f32.mxu1 %vm4303_vm1, %v6103_v35  ;;  %v4155_v52 = vpack.c.bf16 %v1511_v53, %v1510_v27  ;;  %v6109_v3 = vld [vmem:[#allocation17_spill] sm:$0xff]  ;;  %v6114_v53 = vld [vmem:[#allocation7_spill] sm:$0xff] }
 0x20f   :  { %v1424_v7 = vmax.f32 %v6106_v39, %v1399_v1  ;;  %4151 = vmatprep.subr.bf16.mxu1 %v6105_v42  ;;  %v1480_v63 = vmax.f32 %v1455_v18, 0.0  ;;  %v6110_v40 = vmax.f32 %v5162_v11, %v6109_v3  ;;  %v1518_v39 = vld [vmem:[%s6046_s3 + $0x80] sm:$0xff] }
 0x210   :  { %v1090_v51 = vpop.f32.mrb[138].mxu0  ;;  %v6121_v3 = vld [vmem:[#allocation21_spill] sm:$0xff] }
 0x211   :  { %v1400_v15 = vmax.f32 %v1090_v51, %v5273_v37  ;;  %3901 = vmatmul.mubr.msk.f32.vlgmr.msra.gmra.mrb[94].mxu1 %vm1552_vm2, %v1479_v0  ;;  %v1092_v16 = vpop.f32.mrb[139].mxu0  ;;  %v1456_v59 = vadd.f32 %v5591_v32, %v1424_v7  ;;  %v1512_v37 = vld [vmem:[%s6046_s3 + $0x50] sm:$0xff]  ;;  %v1519_v7 = vld [vmem:[%s6046_s3 + $0x88] sm:$0xff] }
 0x212   :  { %4153 = vmatpush3.bf16.msra.mxu1 %v4152_v44  ;;  %3907 = vmatprep.mubr.msk.f32.mxu1 %vm4303_vm1, %v6103_v35  ;;  %v4158_v60 = vpack.c.bf16 %v1513_v57, %v1512_v37  ;;  %v6112_v44 = vld [vmem:[#allocation18_spill] sm:$0xff]  ;;  %v1521_v37 = vld [vmem:[%s6046_s3 + $0x98] sm:$0xff] }
 0x213   :  { %v1425_v6 = vmax.f32 %v6107_v46, %v1400_v15  ;;  %4154 = vmatprep.subr.bf16.mxu1 %v6105_v42  ;;  %v1481_v14 = vmax.f32 %v1456_v59, 0.0  ;;  %v6113_v0 = vmax.f32 %v5171_v17, %v6112_v44  ;;  %v4167_v17 = vpack.c.bf16 %v1519_v7, %v1518_v39  ;;  %v1527_v39 = vld [vmem:[%s6046_s3 + $0xc8] sm:$0xff] }
 0x214   :  { %v1095_v36 = vpop.f32.mrb[140].mxu0 }
 0x215   :  { %v1401_v19 = vmax.f32 %v1095_v36, %v5284_v48  ;;  %3908 = vmatmul.mubr.msk.f32.vlgmr.msra.gmra.mrb[96].mxu1 %vm1552_vm2, %v1480_v63  ;;  %v1097_v24 = vpop.f32.mrb[141].mxu0  ;;  %v1457_v8 = vadd.f32 %v5591_v32, %v1425_v6  ;;  %v1514_v48 = vld [vmem:[%s6046_s3 + $0x60] sm:$0xff]  ;;  %v6115_v63 = vld [vmem:[#allocation19_spill] sm:$0xff] }
 0x216   :  { %4156 = vmatpush3.bf16.msra.mxu1 %v4155_v52  ;;  %3914 = vmatprep.mubr.msk.f32.mxu1 %vm4303_vm1, %v6103_v35  ;;  %v4161_v5 = vpack.c.bf16 %v1515_v22, %v1514_v48  ;;  %v6116_v59 = vmax.f32 %v5180_v23, %v6115_v63  ;;  %v1520_v6 = vld [vmem:[%s6046_s3 + $0x90] sm:$0xff]  ;;  %v6117_v36 = vld [vmem:[#allocation8_spill] sm:$0xff]  ;;  %v1523_v22 = vld [vmem:[%s6046_s3 + $0xa8] sm:$0xff] }
 0x217   :  { %v1426_v28 = vmax.f32 %v6108_v12, %v1401_v19  ;;  %4157 = vmatprep.subr.bf16.mxu1 %v6105_v42  ;;  %v1482_v54 = vmax.f32 %v1457_v8, 0.0  ;;  %v4170_v23 = vpack.c.bf16 %v1521_v37, %v1520_v6  ;;  %v6118_v8 = vld [vmem:[#allocation20_spill] sm:$0xff] }
 0x218   :  { %v1100_v4 = vpop.f32.mrb[142].mxu0  ;;  %v6119_v12 = vmax.f32 %v5189_v29, %v6118_v8  ;;  %v1522_v48 = vld [vmem:[%s6046_s3 + $0xa0] sm:$0xff] }
 0x219   :  { %v1402_v43 = vmax.f32 %v1100_v4, %v5295_v62  ;;  %3915 = vmatmul.mubr.msk.f32.vlgmr.msra.gmra.mrb[98].mxu1 %vm1552_vm2, %v1481_v14  ;;  %v1102_v13 = vpop.f32.mrb[143].mxu0  ;;  %v1458_v61 = vadd.f32 %v5591_v32, %v1426_v28  ;;  %v1516_v62 = vld [vmem:[%s6046_s3 + $0x70] sm:$0xff]  ;;  %v4173_v29 = vpack.c.bf16 %v1523_v22, %v1522_v48  ;;  %v6129_v37 = vld [vmem:[#allocation12_spill] sm:$0xff]  ;;  %v6132_v48 = vld [vmem:[#allocation13_spill] sm:$0xff] }
 0x21a   :  { %4159 = vmatpush3.bf16.msra.mxu1 %v4158_v60  ;;  %3921 = vmatprep.mubr.msk.f32.mxu1 %vm4303_vm1, %v6103_v35  ;;  %v4164_v11 = vpack.c.bf16 %v1517_v58, %v1516_v62  ;;  %v1524_v62 = vld [vmem:[%s6046_s3 + $0xb0] sm:$0xff]  ;;  %v1525_v58 = vld [vmem:[%s6046_s3 + $0xb8] sm:$0xff]  ;;  %v1530_v8 = vld [vmem:[%s6046_s3 + $0xe0] sm:$0xff] }
 0x21b   :  { %v1427_v45 = vmax.f32 %v6110_v40, %v1402_v43  ;;  %4160 = vmatprep.subr.bf16.mxu1 %v6105_v42  ;;  %v1483_v1 = vmax.f32 %v1458_v61, 0.0  ;;  %v6120_v43 = vld [vmem:[#allocation9_spill] sm:$0xff]  ;;  %v6122_v40 = vmax.f32 %v5198_v38, %v6121_v3  ;;  %v4176_v38 = vpack.c.bf16 %v1525_v58, %v1524_v62  ;;  %v1533_v3 = vld [vmem:[%s6046_s3 + $0xf8] sm:$0xff] }
 0x21c   :  { %v1105_v30 = vpop.f32.mrb[144].mxu0 }
 0x21d   :  { %v1403_v55 = vmax.f32 %v1105_v30, %v6111_v20  ;;  %3922 = vmatmul.mubr.msk.f32.vlgmr.msra.gmra.mrb[100].mxu1 %vm1552_vm2, %v1482_v54  ;;  %v1107_v49 = vpop.f32.mrb[145].mxu0  ;;  %v1459_v26 = vadd.f32 %v5591_v32, %v1427_v45  ;;  %v6123_v20 = vld [vmem:[#allocation10_spill] sm:$0xff] }
 0x21e   :  { %4162 = vmatpush3.bf16.msra.mxu1 %v4161_v5  ;;  %3928 = vmatprep.mubr.msk.f32.mxu1 %vm4303_vm1, %v6103_v35 }
 0x21f   :  { %v1428_v18 = vmax.f32 %v6113_v0, %v1403_v55  ;;  %4163 = vmatprep.subr.bf16.mxu1 %v6105_v42  ;;  %v1484_v16 = vmax.f32 %v1459_v26, 0.0  ;;  %v6124_v26 = vld [vmem:[#allocation22_spill] sm:$0xff] }
 0x220   :  { %v1110_v27 = vpop.f32.mrb[146].mxu0  ;;  %v6125_v44 = vmax.f32 %v5207_v47, %v6124_v26  ;;  %v1535_v26 = vld [vmem:[%s6046_s3 + $0x108] sm:$0xff] }
 0x221   :  { %v1404_v51 = vmax.f32 %v1110_v27, %v6114_v53  ;;  %3929 = vmatmul.mubr.msk.f32.vlgmr.msra.gmra.mrb[102].mxu1 %vm1552_vm2, %v1483_v1  ;;  %v1112_v15 = vpop.f32.mrb[147].mxu0  ;;  %v1460_v52 = vadd.f32 %v5591_v32, %v1428_v18  ;;  %v1526_v18 = vld [vmem:[%s6046_s3 + $0xc0] sm:$0xff]  ;;  %v6126_v27 = vld [vmem:[#allocation11_spill] sm:$0xff] }
 0x222   :  { %4165 = vmatpush3.bf16.msra.mxu1 %v4164_v11  ;;  %3935 = vmatprep.mubr.msk.f32.mxu1 %vm4303_vm1, %v6103_v35  ;;  %v4179_v47 = vpack.c.bf16 %v1527_v39, %v1526_v18  ;;  %v6139_v39 = vld [vmem:[#allocation15_spill] sm:$0xff] }
 0x223   :  { %v1429_v46 = vmax.f32 %v6116_v59, %v1404_v51  ;;  %4166 = vmatprep.subr.bf16.mxu1 %v6105_v42  ;;  %v1485_v60 = vmax.f32 %v1460_v52, 0.0  ;;  %v1528_v59 = vld [vmem:[%s6046_s3 + $0xd0] sm:$0xff] }
 0x224   :  { %v1115_v57 = vpop.f32.mrb[148].mxu0 }
 0x225   :  { %v1405_v19 = vmax.f32 %v1115_v57, %v6117_v36  ;;  %3936 = vmatmul.mubr.msk.f32.vlgmr.msra.gmra.mrb[104].mxu1 %vm1552_vm2, %v1484_v16  ;;  %v1117_v24 = vpop.f32.mrb[149].mxu0  ;;  %v1461_v14 = vadd.f32 %v5591_v32, %v1429_v46  ;;  %v6127_v16 = vld [vmem:[#allocation23_spill] sm:$0xff] }
 0x226   :  { %4168 = vmatpush3.bf16.msra.mxu1 %v4167_v17  ;;  %3942 = vmatprep.mubr.msk.f32.mxu1 %vm4303_vm1, %v6103_v35  ;;  %v6128_v52 = vmax.f32 %v5216_v56, %v6127_v16  ;;  %v1529_v46 = vld [vmem:[%s6046_s3 + $0xd8] sm:$0xff] }
 0x227   :  { %v1430_v28 = vmax.f32 %v6119_v12, %v1405_v19  ;;  %4169 = vmatprep.subr.bf16.mxu1 %v6105_v42  ;;  %v1486_v54 = vmax.f32 %v1461_v14, 0.0  ;;  %v4182_v56 = vpack.c.bf16 %v1529_v46, %v1528_v59  ;;  %v1531_v12 = vld [vmem:[%s6046_s3 + $0xe8] sm:$0xff] }
 0x228   :  { %v1120_v4 = vpop.f32.mrb[150].mxu0 }
 0x229   :  { %v1406_v13 = vmax.f32 %v1120_v4, %v6120_v43  ;;  %3943 = vmatmul.mubr.msk.f32.vlgmr.msra.gmra.mrb[106].mxu1 %vm1552_vm2, %v1485_v60  ;;  %v1122_v5 = vpop.f32.mrb[151].mxu0  ;;  %v1462_v61 = vadd.f32 %v5591_v32, %v1430_v28 }
 0x22a   :  { %4171 = vmatpush3.bf16.msra.mxu1 %v4170_v23  ;;  %3949 = vmatprep.mubr.msk.f32.mxu1 %vm4303_vm1, %v6103_v35  ;;  %v6130_v23 = vld [vmem:[#allocation24_spill] sm:$0xff]  ;;  %v6133_v5 = vld [vmem:[#allocation25_spill] sm:$0xff] }
 0x22b   :  { %v1431_v45 = vmax.f32 %v6122_v40, %v1406_v13  ;;  %4172 = vmatprep.subr.bf16.mxu1 %v6105_v42  ;;  %v1487_v11 = vmax.f32 %v1462_v61, 0.0  ;;  %v6131_v60 = vmax.f32 %v5227_v2, %v6130_v23  ;;  %v4185_v2 = vpack.c.bf16 %v1531_v12, %v1530_v8  ;;  %v1532_v61 = vld [vmem:[%s6046_s3 + $0xf0] sm:$0xff]  ;;  %v1539_v8 = vld [vmem:[%s6046_s3 + $0x128] sm:$0xff] }
 0x22c   :  { %v1125_v30 = vpop.f32.mrb[152].mxu0 }
 0x22d   :  { %v1407_v55 = vmax.f32 %v1125_v30, %v6123_v20  ;;  %3950 = vmatmul.mubr.msk.f32.vlgmr.msra.gmra.mrb[108].mxu1 %vm1552_vm2, %v1486_v54  ;;  %v1127_v49 = vpop.f32.mrb[153].mxu0  ;;  %v1463_v1 = vadd.f32 %v5591_v32, %v1431_v45  ;;  %v6135_v45 = vld [vmem:[#allocation14_spill] sm:$0xff] }
 0x22e   :  { %4174 = vmatpush3.bf16.msra.mxu1 %v4173_v29  ;;  %3956 = vmatprep.mubr.msk.f32.mxu1 %vm4303_vm1, %v6103_v35  ;;  %v6134_v29 = vmax.f32 %v5238_v10, %v6133_v5  ;;  %v4188_v10 = vpack.c.bf16 %v1533_v3, %v1532_v61  ;;  %v6137_v49 = vld [vmem:[#allocation26_spill] sm:$0xff]  ;;  %v1542_v61 = vld [vmem:[%s6046_s3 + $0x140] sm:$0xff] }
 0x22f   :  { %v1432_v0 = vmax.f32 %v6125_v44, %v1407_v55  ;;  %4175 = vmatprep.subr.bf16.mxu1 %v6105_v42  ;;  %v1488_v15 = vmax.f32 %v1463_v1, 0.0  ;;  %v6136_v55 = vld [vmem:[#allocation5_spill] sm:$0xff] }
 0x230   :  { %v1130_v7 = vpop.f32.mrb[154].mxu0  ;;  %v1534_v1 = vld [vmem:[%s6046_s3 + $0x100] sm:$0xff]  ;;  %v1543_v3 = vld [vmem:[%s6046_s3 + $0x148] sm:$0xff] }
 0x231   :  { %v1408_v53 = vmax.f32 %v1130_v7, %v6126_v27  ;;  %3957 = vmatmul.mubr.msk.f32.vlgmr.msra.gmra.mrb[110].mxu1 %vm1552_vm2, %v1487_v11  ;;  %v1132_v51 = vpop.f32.mrb[155].mxu0  ;;  %v1464_v17 = vadd.f32 %v5591_v32, %v1432_v0 }
 0x232   :  { %4177 = vmatpush3.bf16.msra.mxu1 %v4176_v38  ;;  %3963 = vmatprep.mubr.msk.f32.mxu1 %vm4303_vm1, %v6103_v35  ;;  %v6138_v38 = vmax.f32 %v6136_v55, %v6137_v49 }
 0x233   :  { %v1433_v63 = vmax.f32 %v6128_v52, %v1408_v53  ;;  %4178 = vmatprep.subr.bf16.mxu1 %v6105_v42  ;;  %v1489_v19 = vmax.f32 %v1464_v17, 0.0  ;;  %v4191_v53 = vpack.c.bf16 %v1535_v26, %v1534_v1  ;;  %v1536_v52 = vld [vmem:[%s6046_s3 + $0x110] sm:$0xff]  ;;  %v1547_v1 = vld [vmem:[%s6046_s3 + $0x168] sm:$0xff] }
 0x234   :  { %v1135_v6 = vpop.f32.mrb[156].mxu0 }
 0x235   :  { %v1409_v57 = vmax.f32 %v1135_v6, %v6129_v37  ;;  %3964 = vmatmul.mubr.msk.f32.vlgmr.msra.gmra.mrb[112].mxu1 %vm1552_vm2, %v1488_v15  ;;  %v1137_v36 = vpop.f32.mrb[157].mxu0  ;;  %v1465_v24 = vadd.f32 %v5591_v32, %v1433_v63  ;;  %v6140_v15 = vld [vmem:[#allocation27_spill] sm:$0xff]  ;;  %v6142_v37 = vld [vmem:[#allocation16_spill] sm:$0xff] }
 0x236   :  { %4180 = vmatpush3.bf16.msra.mxu1 %v4179_v47  ;;  %3970 = vmatprep.mubr.msk.f32.mxu1 %vm4303_vm1, %v6103_v35  ;;  %v1343_v44 = vpop.f32.mrb[76].mxu1  ;;  %v6141_v17 = vmax.f32 %v5260_v25, %v6140_v15  ;;  %v1537_v63 = vld [vmem:[%s6046_s3 + $0x118] sm:$0xff] }
 0x237   :  { %v1434_v14 = vmax.f32 %v6131_v60, %v1409_v57  ;;  %4181 = vmatprep.subr.bf16.mxu1 %v6105_v42  ;;  %v1490_v43 = vmax.f32 %v1465_v24, 0.0  ;;  %v1344_v18 = vpop.f32.mrb[77].mxu1  ;;  %v4194_v25 = vpack.c.bf16 %v1537_v63, %v1536_v52  ;;  %v6143_v24 = vld [vmem:[#allocation28_spill] sm:$0xff]  ;;  %v3412_v63 = vld [vmem:[%s6048_s5 + $0x10] sm:$0xff] }
 0x238   :  { %v1140_v28 = vpop.f32.mrb[158].mxu0  ;;  %v6144_v23 = vmax.f32 %v5271_v34, %v6143_v24  ;;  %v1474_v18 = vadd.f32 %v5591_v32, %v5560_v33  ;;  %v1475_v33 = vadd.f32 %v5591_v32, %v5566_v9  ;;  %v1476_v9 = vadd.f32 %v5591_v32, %v5572_v31  ;;  %v3410_v31 = vld [vmem:[%s6048_s5] sm:$0xff]  ;;  %v3419_v24 = vld [vmem:[%s6048_s5 + $0x48] sm:$0xff] }
 0x239   :  { %v1410_v22 = vmax.f32 %v1140_v28, %v6132_v48  ;;  %3971 = vmatmul.mubr.msk.f32.vlgmr.msra.gmra.mrb[114].mxu1 %vm1552_vm2, %v1489_v19  ;;  %v1142_v4 = vpop.f32.mrb[159].mxu0  ;;  %v1466_v13 = vadd.f32 %v5591_v32, %v1434_v14  ;;  %v1538_v14 = vld [vmem:[%s6046_s3 + $0x120] sm:$0xff] }
 0x23a   :  { %4183 = vmatpush3.bf16.msra.mxu1 %v4182_v56  ;;  %3977 = vmatprep.mubr.msk.f32.mxu1 %vm4303_vm1, %v6103_v35  ;;  %v4197_v34 = vpack.c.bf16 %v1539_v8, %v1538_v14  ;;  %v1540_v4 = vld [vmem:[%s6046_s3 + $0x130] sm:$0xff]  ;;  %v3421_v14 = vld [vmem:[%s6048_s5 + $0x58] sm:$0xff] }
 0x23b   :  { %v1435_v54 = vmax.f32 %v6134_v29, %v1410_v22  ;;  %4184 = vmatprep.subr.bf16.mxu1 %v6105_v42  ;;  %v1491_v30 = vmax.f32 %v1466_v13, 0.0  ;;  %v1471_v29 = vadd.f32 %v5591_v32, %v5542_v41  ;;  %v4203_v41 = vpack.c.bf16 %v1543_v3, %v1542_v61 }
 0x23c   :  { %v1145_v40 = vpop.f32.mrb[160].mxu0 }
 0x23d   :  { %v1411_v62 = vmax.f32 %v1145_v40, %v6135_v45  ;;  %3978 = vmatmul.mubr.msk.f32.vlgmr.msra.gmra.mrb[116].mxu1 %vm1552_vm2, %v1490_v43  ;;  %v1147_v58 = vpop.f32.mrb[161].mxu0  ;;  %v1467_v20 = vadd.f32 %v5591_v32, %v1435_v54  ;;  %v1347_v59 = vpop.f32.mrb[78].mxu1 }
 0x23e   :  { %4186 = vmatpush3.bf16.msra.mxu1 %v4185_v2  ;;  %3984 = vmatprep.mubr.msk.f32.mxu1 %vm4303_vm1, %v6103_v35  ;;  %v1348_v6 = vpop.f32.mrb[79].mxu1  ;;  %v1541_v2 = vld [vmem:[%s6046_s3 + $0x138] sm:$0xff]  ;;  %v1472_v58 = vadd.f32 %v5591_v32, %v5548_v21 }
 0x23f   :  { %v1436_v11 = vmax.f32 %v6138_v38, %v1411_v62  ;;  %4187 = vmatprep.subr.bf16.mxu1 %v6105_v42  ;;  %v1492_v51 = vmax.f32 %v1467_v20, 0.0  ;;  %v4200_v5 = vpack.c.bf16 %v1541_v2, %v1540_v4  ;;  %v1496_v62 = vmax.f32 %v1471_v29, 0.0  ;;  %v3413_v59 = vld [vmem:[%s6048_s5 + $0x18] sm:$0xff]  ;;  %v3414_v6 = vld [vmem:[%s6048_s5 + $0x20] sm:$0xff] }
 0x240   :  { %v1150_v0 = vpop.f32.mrb[162].mxu0  ;;  %v1497_v21 = vmax.f32 %v1472_v58, 0.0  ;;  %v1473_v38 = vadd.f32 %v5591_v32, %v5554_v50 }
 0x241   :  { %v1412_v7 = vmax.f32 %v1150_v0, %v6139_v39  ;;  %3985 = vmatmul.mubr.msk.f32.vlgmr.msra.gmra.mrb[118].mxu1 %vm1552_vm2, %v1491_v30  ;;  %v1152_v27 = vpop.f32.mrb[163].mxu0  ;;  %v1468_v47 = vadd.f32 %v5591_v32, %v1436_v11  ;;  %v1351_v12 = vpop.f32.mrb[80].mxu1  ;;  %v1545_v30 = vld [vmem:[%s6046_s3 + $0x158] sm:$0xff]  ;;  %v1546_v11 = vld [vmem:[%s6046_s3 + $0x160] sm:$0xff]  ;;  %v1548_v39 = vld [vmem:[%s6046_s3 + $0x170] sm:$0xff] }
 0x242   :  { %4189 = vmatpush3.bf16.msra.mxu1 %v4188_v10  ;;  %3991 = vmatprep.mubr.msk.f32.mxu1 %vm4303_vm1, %v6103_v35  ;;  %v1352_v28 = vpop.f32.mrb[81].mxu1  ;;  %v1544_v10 = vld [vmem:[%s6046_s3 + $0x150] sm:$0xff]  ;;  %v4209_v0 = vpack.c.bf16 %v1547_v1, %v1546_v11  ;;  %v1498_v50 = vmax.f32 %v1473_v38, 0.0  ;;  %v3422_v12 = vld [vmem:[%s6048_s5 + $0x60] sm:$0xff] }
 0x243   :  { %v1437_v16 = vmax.f32 %v6141_v17, %v1412_v7  ;;  %4190 = vmatprep.subr.bf16.mxu1 %v6105_v42  ;;  %v1493_v56 = vmax.f32 %v1468_v47, 0.0  ;;  %v4206_v49 = vpack.c.bf16 %v1545_v30, %v1544_v10  ;;  %v1549_v7 = vld [vmem:[%s6046_s3 + $0x178] sm:$0xff]  ;;  %v1551_v47 = vld [vmem:[%s6046_s3 + $0x188] sm:$0xff]  ;;  %v1500_v17 = vmax.f32 %v1475_v33, 0.0 }
 0x244   :  { %v1155_v46 = vpop.f32.mrb[164].mxu0  ;;  %v4212_v27 = vpack.c.bf16 %v1549_v7, %v1548_v39  ;;  %v3423_v28 = vld [vmem:[%s6048_s5 + $0x68] sm:$0xff] }
 0x245   :  { %v1413_v57 = vmax.f32 %v1155_v46, %v6142_v37  ;;  %3992 = vmatmul.mubr.msk.f32.vlgmr.msra.gmra.mrb[120].mxu1 %vm1552_vm2, %v1492_v51  ;;  %v1157_v36 = vpop.f32.mrb[165].mxu0  ;;  %v1469_v19 = vadd.f32 %v5591_v32, %v1437_v16  ;;  %v1355_v43 = vpop.f32.mrb[82].mxu1  ;;  %v1550_v51 = vld [vmem:[%s6046_s3 + $0x180] sm:$0xff]  ;;  %v1501_v16 = vmax.f32 %v1476_v9, 0.0  ;;  %v4221_v46 = vpack.c.bf16 %v3413_v59, %v3412_v63  ;;  %v3415_v37 = vld [vmem:[%s6048_s5 + $0x28] sm:$0xff] }
 0x246   :  { %4192 = vmatpush3.bf16.msra.mxu1 %v4191_v53  ;;  %3998 = vmatprep.mubr.msk.f32.mxu1 %vm4303_vm1, %v6103_v35  ;;  %v1356_v13 = vpop.f32.mrb[83].mxu1  ;;  %v1499_v53 = vmax.f32 %v1474_v18, 0.0  ;;  %v4215_v15 = vpack.c.bf16 %v1551_v47, %v1550_v51  ;;  %v3416_v36 = vld [vmem:[%s6048_s5 + $0x30] sm:$0xff] }
 0x247   :  { %v1438_v60 = vmax.f32 %v6144_v23, %v1413_v57  ;;  %4193 = vmatprep.subr.bf16.mxu1 %v6105_v42  ;;  %v1494_v48 = vmax.f32 %v1469_v19, 0.0  ;;  %v4224_v57 = vpack.c.bf16 %v3415_v37, %v3414_v6  ;;  %v3418_v19 = vld [vmem:[%s6048_s5 + $0x40] sm:$0xff] }
 0x248   :  { %v4230_v23 = vpack.c.bf16 %v3419_v24, %v3418_v19 }
 0x249   :  { %3999 = vmatmul.mubr.msk.f32.vlgmr.msra.gmra.mrb[122].mxu1 %vm1552_vm2, %v1493_v56  ;;  %v1470_v22 = vadd.f32 %v5591_v32, %v1438_v60  ;;  %v1359_v40 = vpop.f32.mrb[84].mxu1  ;;  %v3411_v32 = vld [vmem:[%s6048_s5 + $0x8] sm:$0xff]  ;;  %v3420_v60 = vld [vmem:[%s6048_s5 + $0x50] sm:$0xff] }
 0x24a   :  { %4195 = vmatpush3.bf16.msra.mxu1 %v4194_v25  ;;  %4005 = vmatprep.mubr.msk.f32.mxu1 %vm4303_vm1, %v6103_v35  ;;  %v1360_v45 = vpop.f32.mrb[85].mxu1  ;;  %v4218_v52 = vpack.c.bf16 %v3411_v32, %v3410_v31  ;;  %v3417_v25 = vld [vmem:[%s6048_s5 + $0x38] sm:$0xff]  ;;  %v4233_v8 = vpack.c.bf16 %v3421_v14, %v3420_v60 }
 0x24b   :  { %4196 = vmatprep.subr.bf16.mxu1 %v6105_v42  ;;  %v1495_v54 = vmax.f32 %v1470_v22, 0.0  ;;  %v4227_v56 = vpack.c.bf16 %v3417_v25, %v3416_v36 }
 0x24d   :  { %4006 = vmatmul.mubr.msk.f32.vlgmr.msra.gmra.mrb[124].mxu1 %vm1552_vm2, %v1494_v48  ;;  %v1363_v20 = vpop.f32.mrb[86].mxu1  ;;  %v3424_v48 = vld [vmem:[%s6048_s5 + $0x70] sm:$0xff] }
 0x24e   :  { %4198 = vmatpush3.bf16.msra.mxu1 %v4197_v34  ;;  %4012 = vmatprep.mubr.msk.f32.mxu1 %vm4303_vm1, %v6103_v35  ;;  %v1364_v55 = vpop.f32.mrb[87].mxu1  ;;  %v4236_v34 = vpack.c.bf16 %v3423_v28, %v3422_v12 }
 0x24f   :  { %4199 = vmatprep.subr.bf16.mxu1 %v6105_v42 }
 0x251   :  { %4013 = vmatmul.mubr.msk.f32.vlgmr.msra.gmra.mrb[126].mxu1 %vm1552_vm2, %v1495_v54  ;;  %v1367_v26 = vpop.f32.mrb[88].mxu1 }
 0x252   :  { %4201 = vmatpush3.bf16.msra.mxu1 %v4200_v5  ;;  %4019 = vmatprep.mubr.msk.f32.mxu1 %vm4303_vm1, %v6103_v35  ;;  %v1368_v44 = vpop.f32.mrb[89].mxu1 }
 0x253   :  { %4202 = vmatprep.subr.bf16.mxu1 %v6105_v42 }
 0x255   :  { %4020 = vmatmul.mubr.msk.f32.vlgmr.msra.gmra.mrb[128].mxu1 %vm1552_vm2, %v1496_v62 }
 0x256   :  { %4204 = vmatpush3.bf16.msra.mxu1 %v4203_v41  ;;  %4026 = vmatprep.mubr.msk.f32.mxu1 %vm4303_vm1, %v6103_v35 }
 0x257   :  { %4205 = vmatprep.subr.bf16.mxu1 %v6105_v42 }
 0x259   :  { %4027 = vmatmul.mubr.msk.f32.vlgmr.msra.gmra.mrb[130].mxu1 %vm1552_vm2, %v1497_v21 }
 0x25a   :  { %4207 = vmatpush3.bf16.msra.mxu1 %v4206_v49  ;;  %4033 = vmatprep.mubr.msk.f32.mxu1 %vm4303_vm1, %v6103_v35 }
 0x25b   :  { %4208 = vmatprep.subr.bf16.mxu1 %v6105_v42 }
 0x25d   :  { %4034 = vmatmul.mubr.msk.f32.vlgmr.msra.gmra.mrb[132].mxu1 %vm1552_vm2, %v1498_v50 }
 0x25e   :  { %4210 = vmatpush3.bf16.msra.mxu1 %v4209_v0  ;;  %4040 = vmatprep.mubr.msk.f32.mxu1 %vm4303_vm1, %v6103_v35 }
 0x25f   :  { %4211 = vmatprep.subr.bf16.mxu1 %v6105_v42 }
 0x261   :  { %4041 = vmatmul.mubr.msk.f32.vlgmr.msra.gmra.mrb[134].mxu1 %vm1552_vm2, %v1499_v53 }
 0x262   :  { %4213 = vmatpush3.bf16.msra.mxu1 %v4212_v27  ;;  %4047 = vmatprep.mubr.msk.f32.mxu1 %vm4303_vm1, %v6103_v35 }
 0x263   :  { %4214 = vmatprep.subr.bf16.mxu1 %v6105_v42 }
 0x265   :  { %4048 = vmatmul.mubr.msk.f32.vlgmr.msra.gmra.mrb[136].mxu1 %vm1552_vm2, %v1500_v17 }
 0x266   :  { %4216 = vmatpush3.bf16.msra.mxu1 %v4215_v15  ;;  %4054 = vmatprep.mubr.msk.f32.mxu1 %vm4303_vm1, %v6103_v35 }
 0x267   :  { %4217 = vmatprep.subr.bf16.mxu1 %v6105_v42 }
 0x269   :  { %4055 = vmatmul.mubr.msk.f32.vlgmr.msra.gmra.mrb[138].mxu1 %vm1552_vm2, %v1501_v16 }
 0x26a   :  { %4087 = vmatprep.mubr.msk.f32.mxu1 %vm4303_vm1, %v6103_v35  ;;  %4219 = vmatpush3.bf16.msra.mxu1 %v4218_v52 }
 0x26b   :  { %4220 = vmatprep.subr.bf16.mxu1 %v6105_v42 }
 0x26e   :  { %4222 = vmatpush3.bf16.msra.mxu1 %v4221_v46 }
 0x26f   :  { %4223 = vmatprep.subr.bf16.mxu1 %v6105_v42 }
 0x272   :  { %4225 = vmatpush3.bf16.msra.mxu1 %v4224_v57 }
 0x273   :  { %4226 = vmatprep.subr.bf16.mxu1 %v6105_v42 }
 0x276   :  { %4228 = vmatpush3.bf16.msra.mxu1 %v4227_v56 }
 0x277   :  { %4229 = vmatprep.subr.bf16.mxu1 %v6105_v42 }
 0x27a   :  { %4231 = vmatpush3.bf16.msra.mxu1 %v4230_v23 }
 0x27b   :  { %4232 = vmatprep.subr.bf16.mxu1 %v6105_v42 }
 0x27e   :  { %4234 = vmatpush3.bf16.msra.mxu1 %v4233_v8 }
 0x27f   :  { %4235 = vmatprep.subr.bf16.mxu1 %v6105_v42 }
 0x282   :  { %4237 = vmatpush3.bf16.msra.mxu1 %v4236_v34 }
 0x283   :  { %4085 = vmatprep.subr.mxu1 %v6103_v35 }
 0x286   :  { %4086 = vmatpush3.msra.mxu1 %v3424_v48 }
 0x287   :  { %4238 = vmatprep.subr.bf16.mxu1 %v6105_v42 }
 0x2dc   :  { %v1622_v22 = vpop.f32.mrb[90].mxu1 }
 0x2dd   :  { %v3888_v4 = vpop.f32.mrb[91].mxu1 }
 0x2e0   :  { %v1695_v2 = vpop.f32.mrb[92].mxu1 }
 0x2e1   :  { %v1696_v43 = vadd.f32 %v1695_v2, %v1622_v22  ;;  %v3895_v13 = vpop.f32.mrb[93].mxu1 }
 0x2e4   :  { %v1768_v5 = vpop.f32.mrb[94].mxu1 }
 0x2e5   :  { %v1772_v29 = vadd.f32 %v1768_v5, %v1696_v43  ;;  %v3902_v54 = vpop.f32.mrb[95].mxu1 }
 0x2e8   :  { %v1842_v61 = vpop.f32.mrb[96].mxu1 }
 0x2e9   :  { %v1846_v3 = vadd.f32 %v1842_v61, %v1772_v29  ;;  %v3909_v40 = vpop.f32.mrb[97].mxu1 }
 0x2ea   :  { %v3773_v40 = vld [vmem:[%s6047_s4] ss:$0 sm:$0xff] }
 0x2ec   :  { %v1916_v45 = vpop.f32.mrb[98].mxu1 }
 0x2ed   :  { %v1920_v41 = vadd.f32 %v1916_v45, %v1846_v3  ;;  %v3916_v62 = vpop.f32.mrb[99].mxu1 }
 0x2ee   :  { %v3507_v62 = vld [vmem:[%s6050_s7] sm:$0xff] }
 0x2f0   :  { %v1990_v58 = vpop.f32.mrb[100].mxu1 }
 0x2f1   :  { %v1994_v10 = vadd.f32 %v1990_v58, %v1920_v41  ;;  %v3923_v30 = vpop.f32.mrb[101].mxu1  ;;  %v3508_v58 = vld [vmem:[%s6050_s7 + $0x8] sm:$0xff] }
 0x2f2   :  { %v4239_v30 = vpack.c.bf16 %v3508_v58, %v3507_v62 }
 0x2f4   :  { %v2064_v20 = vpop.f32.mrb[102].mxu1 }
 0x2f5   :  { %v2068_v55 = vadd.f32 %v2064_v20, %v1994_v10  ;;  %v3930_v49 = vpop.f32.mrb[103].mxu1 }
 0x2f6   :  { %v3510_v49 = vld [vmem:[%s6050_s7 + $0x18] sm:$0xff] }
 0x2f8   :  { %v2138_v21 = vpop.f32.mrb[104].mxu1 }
 0x2f9   :  { %v2142_v38 = vadd.f32 %v2138_v21, %v2068_v55  ;;  %v3937_v11 = vpop.f32.mrb[105].mxu1  ;;  %v3509_v55 = vld [vmem:[%s6050_s7 + $0x10] sm:$0xff] }
 0x2fa   :  { %v4242_v21 = vpack.c.bf16 %v3510_v49, %v3509_v55  ;;  %v3512_v11 = vld [vmem:[%s6050_s7 + $0x28] sm:$0xff] }
 0x2fc   :  { %v2212_v1 = vpop.f32.mrb[106].mxu1 }
 0x2fd   :  { %v2216_v26 = vadd.f32 %v2212_v1, %v2142_v38  ;;  %v3944_v44 = vpop.f32.mrb[107].mxu1  ;;  %v3511_v38 = vld [vmem:[%s6050_s7 + $0x20] sm:$0xff] }
 0x2fe   :  { %v4245_v1 = vpack.c.bf16 %v3512_v11, %v3511_v38  ;;  %v3514_v44 = vld [vmem:[%s6050_s7 + $0x38] sm:$0xff] }
 0x300   :  { %v2286_v0 = vpop.f32.mrb[108].mxu1 }
 0x301   :  { %v2290_v50 = vadd.f32 %v2286_v0, %v2216_v26  ;;  %v3951_v18 = vpop.f32.mrb[109].mxu1  ;;  %v3513_v26 = vld [vmem:[%s6050_s7 + $0x30] sm:$0xff] }
 0x302   :  { %v4248_v0 = vpack.c.bf16 %v3514_v44, %v3513_v26  ;;  %v3516_v18 = vld [vmem:[%s6050_s7 + $0x48] sm:$0xff] }
 0x304   :  { %v2360_v39 = vpop.f32.mrb[110].mxu1 }
 0x305   :  { %v2364_v7 = vadd.f32 %v2360_v39, %v2290_v50  ;;  %v3958_v27 = vpop.f32.mrb[111].mxu1  ;;  %v3515_v50 = vld [vmem:[%s6050_s7 + $0x40] sm:$0xff] }
 0x306   :  { %v4251_v39 = vpack.c.bf16 %v3516_v18, %v3515_v50 }
 0x308   :  { %v2434_v53 = vpop.f32.mrb[112].mxu1 }
 0x309   :  { %v2438_v33 = vadd.f32 %v2434_v53, %v2364_v7  ;;  %v3965_v51 = vpop.f32.mrb[113].mxu1  ;;  %v3517_v7 = vld [vmem:[%s6050_s7 + $0x50] sm:$0xf]  ;;  %s4277_s7 = scalar_lea.vmem %s3612_s20, 32 }
 0x30a   :  { %p4278_p0 = scmp.ne.s32.totalorder %s3612_s20, %s4277_s7  ;;  %p4283_p2 = scmp.lt.s32.totalorder %s4277_s7, %s4277_s7 }
 0x30c   :  { %v2508_v47 = vpop.f32.mrb[114].mxu1  ;;  %p4284_p3 = por %p4283_p2, %p4282_p1 }
 0x30d   :  { %v2512_v15 = vadd.f32 %v2508_v47, %v2438_v33  ;;  %v3972_v17 = vpop.f32.mrb[115].mxu1 }
 0x30e   :  { %p4285_p4 = pnand %p4284_p3, %p4278_p0 }
 0x310   :  { %v2582_v9 = vpop.f32.mrb[116].mxu1 }
 0x311   :  { %v2586_v16 = vadd.f32 %v2582_v9, %v2512_v15  ;;  %v3979_v31 = vpop.f32.mrb[117].mxu1 }
 0x314   :  { %v2656_v32 = vpop.f32.mrb[118].mxu1 }
 0x315   :  { %v2660_v52 = vadd.f32 %v2656_v32, %v2586_v16  ;;  %v3986_v63 = vpop.f32.mrb[119].mxu1 }
 0x318   :  { %v2730_v59 = vpop.f32.mrb[120].mxu1 }
 0x319   :  { %v2734_v46 = vadd.f32 %v2730_v59, %v2660_v52  ;;  %v3993_v6 = vpop.f32.mrb[121].mxu1 }
 0x31c   :  { %v2804_v37 = vpop.f32.mrb[122].mxu1 }
 0x31d   :  { %v2808_v57 = vadd.f32 %v2804_v37, %v2734_v46  ;;  %v4000_v36 = vpop.f32.mrb[123].mxu1 }
 0x320   :  { %v2878_v25 = vpop.f32.mrb[124].mxu1 }
 0x321   :  { %v2882_v56 = vadd.f32 %v2878_v25, %v2808_v57  ;;  %v4007_v19 = vpop.f32.mrb[125].mxu1 }
 0x324   :  { %v2952_v24 = vpop.f32.mrb[126].mxu1 }
 0x325   :  { %v2956_v23 = vadd.f32 %v2952_v24, %v2882_v56  ;;  %v4014_v60 = vpop.f32.mrb[127].mxu1 }
 0x328   :  { %v3026_v14 = vpop.f32.mrb[128].mxu1 }
 0x329   :  { %v3030_v8 = vadd.f32 %v3026_v14, %v2956_v23  ;;  %v4021_v12 = vpop.f32.mrb[129].mxu1 }
 0x32c   :  { %v3100_v28 = vpop.f32.mrb[130].mxu1 }
 0x32d   :  { %v3104_v34 = vadd.f32 %v3100_v28, %v3030_v8  ;;  %v4028_v48 = vpop.f32.mrb[131].mxu1 }
 0x330   :  { %v3174_v22 = vpop.f32.mrb[132].mxu1 }
 0x331   :  { %v3178_v4 = vadd.f32 %v3174_v22, %v3104_v34  ;;  %v4035_v2 = vpop.f32.mrb[133].mxu1 }
 0x334   :  { %v3248_v43 = vpop.f32.mrb[134].mxu1 }
 0x335   :  { %v3252_v13 = vadd.f32 %v3248_v43, %v3178_v4  ;;  %v4042_v5 = vpop.f32.mrb[135].mxu1 }
 0x338   :  { %v3322_v29 = vpop.f32.mrb[136].mxu1 }
 0x339   :  { %v3326_v54 = vadd.f32 %v3322_v29, %v3252_v13  ;;  %v4049_v61 = vpop.f32.mrb[137].mxu1 }
 0x33c   :  { %v3396_v3 = vpop.f32.mrb[138].mxu1 }
 0x33d   :  { %v3400_v45 = vadd.f32 %v3396_v3, %v3326_v54  ;;  %v4056_v41 = vpop.f32.mrb[139].mxu1 }
 0x33f   :  { %v3408_v10 = vadd.f32 %v3773_v40, %v3400_v45 }
 0x341   :  { %v3409_v20 = vmax.f32 %v3408_v10, 0.0 }
 0x343   :  { %4088 = vmatmul.mubr.msk.f32.vlgmr.msra.gmra.mrb[140].mxu1 %vm3432_vm3, %v3409_v20 }
 0x344   :  { %4240 = vmatpush3.bf16.msra.mxu1 %v4239_v30  ;;  %4112 = vmatprep.mubr.msk.f32.mxu1 %vm4303_vm1, %v6103_v35 }
 0x345   :  { %4241 = vmatprep.subr.bf16.mxu1 %v6105_v42 }
 0x348   :  { %4243 = vmatpush3.bf16.msra.mxu1 %v4242_v21 }
 0x349   :  { %4244 = vmatprep.subr.bf16.mxu1 %v6105_v42 }
 0x34c   :  { %4246 = vmatpush3.bf16.msra.mxu1 %v4245_v1 }
 0x34d   :  { %4247 = vmatprep.subr.bf16.mxu1 %v6105_v42 }
 0x350   :  { %4249 = vmatpush3.bf16.msra.mxu1 %v4248_v0 }
 0x351   :  { %4250 = vmatprep.subr.bf16.mxu1 %v6105_v42  ;;  %v3774_v42 = vld [vmem:[%s6049_s6] ss:$0 sm:$0xff] }
 0x354   :  { %4252 = vmatpush3.bf16.msra.mxu1 %v4251_v39 }
 0x355   :  { %4110 = vmatprep.subr.mxu1 %v6103_v35  ;;  %v3776_v35 = vld [vmem:[%s6051_s8] ss:$0 sm:$0xff] }
 0x358   :  { %4111 = vmatpush3.msk.msra.mxu1 %vm3529_vm4, %v3517_v7 }
 0x416   :  { %v3502_v27 = vpop.f32.mrb[140].mxu1 }
 0x417   :  { %v3503_v53 = vadd.f32 %v3774_v42, %v3502_v27  ;;  %v4089_v33 = vpop.f32.mrb[141].mxu1 }
 0x419   :  { %v3506_v51 = vmax.f32 %v3503_v53, 0.0 }
 0x41b   :  { %4113 = vmatmul.mubr.msk.f32.vlgmr.msra.gmra.mrb[142].mxu1 %vm3525_vm5, %v3506_v51 }
 0x4ee   :  { %v3599_v47 = vpop.f32.mrb[142].mxu1 }
 0x4ef   :  { %v3600_v15 = vadd.f32 %v3776_v35, %v3599_v47  ;;  %v4114_v17 = vpop.f32.mrb[143].mxu1 }
 0x4f1   :  { %3604 = vst.msk [vmem:[#allocation2] sm:$0x3] %vm3603_vm6, %v3600_v15 }
 0x4f2   :  { %4288 = shalt.err (!%p4285_p4)
}
 0x4f3   :  { %s4289_s21 = scalar_lea.hbm %s6052_s9, 32 }
 0x4f4   :  { %p4290_p5 = scmp.ne.s32.totalorder %s6052_s9, %s4289_s21  ;;  %p4293_p6 = scmp.lt.u32.totalorder %s4289_s21, %s6052_s9 }
 0x4f6   :  { %p4295_p7 = pnand %p4293_p6, %p4290_p5 }
 0x4f8   :  { %4298 = shalt.err (!%p4295_p7)
}
 0x4f9   :  { %3614 = dma.vmem_to_hbm [thread:$0]  %s3612_s20, 32, %s6052_s9, [#allocation3]  }
 0x4fa   :  { %4299 = dma.done.wait [#allocation3], 32  }
 0x4fb   :  { %4300 = vsyncadd [#allocation3], 4294967264 }
 0x4fc   :  { %3618 = vsyncpa [#allocation3], 1 }

</bundles_post_ra>
